<compile_context>
chip_gen: v5e
topology: v5e:2x2
jax: 0.10.0
libtpu: 0.0.40
codegen_flags: <defaults>
</compile_context>

<pallas_src>
import functools
import math

import jax
import jax.numpy as jnp
from jax import lax
from jax.experimental import pallas as pl
from jax.experimental.pallas import tpu as pltpu

LOG2 = math.log(2.0)


def _ssp(x):
    # ShiftedSoftplus: softplus(x) - log(2), numerically stable.  Note ssp(0) == 0, so
    # zero-padded feature columns stay exactly zero through the network.
    return jnp.maximum(x, 0.0) + jnp.log1p(jnp.exp(-jnp.abs(x))) - LOG2


def _round_up(x, m):
    return ((x + m - 1) // m) * m


def _pad2(a, rows, cols):
    return jnp.pad(a, ((0, rows - a.shape[0]), (0, cols - a.shape[1])))


# ---------------------------------------------------------------------------
# Fused Pallas kernel: embedding + all interaction blocks
# ---------------------------------------------------------------------------
def fused_schnet_kernel(
    src_ref, tgt_ref,                                   # scalar prefetch (SMEM, int32)
    zf_ref, pt_ref, wemb_ref, bemb_ref,                 # embedding inputs  (grid-constant)
    eattr_ref, emask_ref,                               # edge inputs       (grid-constant)
    wnn1_ref, bnn1_ref, wnn2_ref, bnn2_ref,             # per-block weights (pipelined over b)
    wl1_ref, wl2_ref, bl2_ref, wlin_ref, blin_ref,
    h_ref,                                              # output: resident VMEM accumulator
    xf_ref, wfil_ref, agg_ref,                          # VMEM scratch
    *, n_edges, compute_dtype,
):
    blk = pl.program_id(0)

    # --- block 0 also computes the initial embedding: h = emblin(z_feat) + ptemb ---
    @pl.when(blk == 0)
    def _():
        h_ref[...] = (
            jnp.dot(zf_ref[...].astype(compute_dtype), wemb_ref[...],
                    preferred_element_type=jnp.float32)
            + bemb_ref[...]
            + pt_ref[...]
        )

    # --- CFConv edge-filter MLP (once per block): W = nn2(SSP(nn1(edge_attr))) * cutoff ---
    t = jnp.dot(eattr_ref[...].astype(compute_dtype), wnn1_ref[...],
                preferred_element_type=jnp.float32) + bnn1_ref[...]
    t = _ssp(t)
    w = jnp.dot(t.astype(compute_dtype), wnn2_ref[...],
                preferred_element_type=jnp.float32) + bnn2_ref[...]
    wfil_ref[...] = w * emask_ref[...]          # precomputed (edge_length <= cutoff) mask

    # --- lin1 (no bias) ---
    h = h_ref[...]
    xf_ref[...] = jnp.dot(h.astype(compute_dtype), wl1_ref[...],
                          preferred_element_type=jnp.float32)

    # --- index-driven gather + scatter-add:  agg[tgt_e] += xf[src_e] * W_e ---
    agg_ref[...] = jnp.zeros_like(agg_ref)

    def edge_body(e, carry):
        s = src_ref[e]
        d = tgt_ref[e]
        msg = xf_ref[pl.ds(s, 1), :] * wfil_ref[pl.ds(e, 1), :]
        agg_ref[pl.ds(d, 1), :] = agg_ref[pl.ds(d, 1), :] + msg
        return carry

    lax.fori_loop(0, n_edges, edge_body, 0)

    # --- lin2 -> SSP -> lin -> residual ---
    y = jnp.dot(agg_ref[...].astype(compute_dtype), wl2_ref[...],
                preferred_element_type=jnp.float32) + bl2_ref[...]
    y = _ssp(y)
    y = jnp.dot(y.astype(compute_dtype), wlin_ref[...],
                preferred_element_type=jnp.float32) + blin_ref[...]
    h_ref[...] = h + y


# ---------------------------------------------------------------------------
# Wrapper: pad to lane-dense layout, stack per-block weights, one pallas_call
# ---------------------------------------------------------------------------
def ca_schnet_forward(z, edge_index, edge_length, edge_attr, params, *,
                      input_dim, cutoff, compute_dtype=jnp.float32):
    N = z.shape[0]
    E = edge_index.shape[1]
    H = params["w_emb"].shape[1]
    F_ = params["blocks"][0]["wl1"].shape[1]
    EC = edge_attr.shape[1]
    blocks = params["blocks"]
    B = len(blocks)

    Np = _round_up(N, 8)
    Ep = _round_up(E, 8)
    Hp = _round_up(H, 128)
    Fp = _round_up(F_, 128)
    ECp = _round_up(EC, 128)
    Dp = _round_up(input_dim, 128)

    # --- activations / edge data (padded once, f32; VPU math stays f32) ---
    z_feat = _pad2(z[:, :input_dim].astype(jnp.float32), Np, Dp)
    ptemb = _pad2(z[:, input_dim:].astype(jnp.float32), Np, Hp)
    eattr = _pad2(edge_attr.astype(jnp.float32), Ep, ECp)
    emask = _pad2((edge_length <= cutoff).astype(jnp.float32).reshape(-1, 1), Ep, 1)

    src = jnp.pad(edge_index[0].astype(jnp.int32), (0, Ep - E))
    tgt = jnp.pad(edge_index[1].astype(jnp.int32), (0, Ep - E))

    # --- weights: padded + stacked per block; matmul weights in compute_dtype ---
    w_emb = _pad2(params["w_emb"], Dp, Hp).astype(compute_dtype)
    b_emb = _pad2(params["b_emb"], 1, Hp).astype(jnp.float32)

    def stack_w(name, rows, cols):
        return jnp.stack([_pad2(bp[name], rows, cols) for bp in blocks]).astype(compute_dtype)

    def stack_b(name, cols):
        return jnp.stack([_pad2(bp[name], 1, cols) for bp in blocks]).astype(jnp.float32)

    wnn1 = stack_w("wnn1", ECp, Fp)
    bnn1 = stack_b("bnn1", Fp)
    wnn2 = stack_w("wnn2", Fp, Fp)
    bnn2 = stack_b("bnn2", Fp)
    wl1 = stack_w("wl1", Hp, Fp)
    wl2 = stack_w("wl2", Fp, Hp)
    bl2 = stack_b("bl2", Hp)
    wlin = stack_w("wlin", Hp, Hp)
    blin = stack_b("blin", Hp)

    const2 = lambda b, s, t: (0, 0)          # grid-constant inputs: resident in VMEM
    perblk = lambda b, s, t: (b, 0, 0)       # per-block stacked weights: double-buffered

    grid_spec = pltpu.PrefetchScalarGridSpec(
        num_scalar_prefetch=2,
        grid=(B,),
        in_specs=[
            pl.BlockSpec((Np, Dp), const2),         # z_feat
            pl.BlockSpec((Np, Hp), const2),         # ptemb
            pl.BlockSpec((Dp, Hp), const2),         # w_emb
            pl.BlockSpec((1, Hp), const2),          # b_emb
            pl.BlockSpec((Ep, ECp), const2),        # edge_attr
            pl.BlockSpec((Ep, 1), const2),          # cutoff mask
            pl.BlockSpec((None, ECp, Fp), perblk),  # wnn1
            pl.BlockSpec((None, 1, Fp), perblk),    # bnn1
            pl.BlockSpec((None, Fp, Fp), perblk),   # wnn2
            pl.BlockSpec((None, 1, Fp), perblk),    # bnn2
            pl.BlockSpec((None, Hp, Fp), perblk),   # wl1
            pl.BlockSpec((None, Fp, Hp), perblk),   # wl2
            pl.BlockSpec((None, 1, Hp), perblk),    # bl2
            pl.BlockSpec((None, Hp, Hp), perblk),   # wlin
            pl.BlockSpec((None, 1, Hp), perblk),    # blin
        ],
        out_specs=pl.BlockSpec((Np, Hp), const2),   # h: resident accumulator across blocks
        scratch_shapes=[
            pltpu.VMEM((Np, Fp), jnp.float32),      # xf = h @ lin1
            pltpu.VMEM((Ep, Fp), jnp.float32),      # edge filters W
            pltpu.VMEM((Np, Fp), jnp.float32),      # scatter-add accumulator
        ],
    )

    kernel = functools.partial(fused_schnet_kernel, n_edges=E, compute_dtype=compute_dtype)

    h_pad = pl.pallas_call(
        kernel,
        grid_spec=grid_spec,
        out_shape=jax.ShapeDtypeStruct((Np, Hp), jnp.float32),
        compiler_params=pltpu.CompilerParams(
            dimension_semantics=("arbitrary",),          # h carried block -> block
            vmem_limit_bytes=48 * 1024 * 1024,           # fits v7x's 64 MiB with headroom
        ),
    )(src, tgt, z_feat, ptemb, w_emb, b_emb, eattr, emask,
      wnn1, bnn1, wnn2, bnn2, wl1, wl2, bl2, wlin, blin)

    return h_pad[:N, :H]


# ---------------------------------------------------------------------------
# Pure-JAX reference for correctness check
# ---------------------------------------------------------------------------
def reference_forward(z, edge_index, edge_length, edge_attr, params, *, input_dim, cutoff):
    N = z.shape[0]
    h = z[:, :input_dim] @ params["w_emb"] + params["b_emb"] + z[:, input_dim:]
    src, tgt = edge_index[0], edge_index[1]
    for blk in params["blocks"]:
        W = _ssp(edge_attr @ blk["wnn1"] + blk["bnn1"]) @ blk["wnn2"] + blk["bnn2"]
        C = (edge_length <= cutoff).astype(jnp.float32)
        W = W * C[:, None]
        xf = h @ blk["wl1"]
        msg = xf[src] * W
        agg = jnp.zeros((N, xf.shape[1]), jnp.float32).at[tgt].add(msg)
        y = agg @ blk["wl2"] + blk["bl2"]
        y = _ssp(y)
        y = y @ blk["wlin"] + blk["blin"]
        h = h + y
    return h


# ---------------------------------------------------------------------------
# Deterministic parameter init (shapes per module __init__, weights stored (in, out))
# ---------------------------------------------------------------------------
def init_params(key, *, hidden, num_filters, edge_channels, input_dim, num_interactions):
    def lin(k, fan_in, fan_out, bias=True):
        kw, kb = jax.random.split(k)
        bound = 1.0 / math.sqrt(fan_in)
        w = jax.random.uniform(kw, (fan_in, fan_out), jnp.float32, -bound, bound)
        b = jax.random.uniform(kb, (1, fan_out), jnp.float32, -bound, bound) if bias else None
        return w, b

    keys = jax.random.split(key, 1 + num_interactions)
    w_emb, b_emb = lin(keys[0], input_dim, hidden)
    blocks = []
    for i in range(num_interactions):
        ks = jax.random.split(keys[1 + i], 5)
        wnn1, bnn1 = lin(ks[0], edge_channels, num_filters)
        wnn2, bnn2 = lin(ks[1], num_filters, num_filters)
        wl1, _ = lin(ks[2], hidden, num_filters, bias=False)
        wl2, bl2 = lin(ks[3], num_filters, hidden)
        wlin, blin = lin(ks[4], hidden, hidden)
        blocks.append(dict(wnn1=wnn1, bnn1=bnn1, wnn2=wnn2, bnn2=bnn2,
                           wl1=wl1, wl2=wl2, bl2=bl2, wlin=wlin, blin=blin))
    return dict(w_emb=w_emb, b_emb=b_emb, blocks=blocks)


# ---------------------------------------------------------------------------
if __name__ == "__main__":
    # small shapes (N not a multiple of 8 to exercise padding)
    N, E = 12, 24
    HIDDEN, FILTERS, EDGE_CH, INPUT_DIM = 32, 32, 16, 5
    NUM_INTERACTIONS = 3
    CUTOFF = 10.0

    key = jax.random.PRNGKey(0)
    k_param, k_z, k_ei, k_el, k_ea = jax.random.split(key, 5)

    params = init_params(
        k_param, hidden=HIDDEN, num_filters=FILTERS, edge_channels=EDGE_CH,
        input_dim=INPUT_DIM, num_interactions=NUM_INTERACTIONS,
    )

    # z = [node features (input_dim) | time embedding (hidden)]  -> (N, input_dim + hidden)
    z = jax.random.normal(k_z, (N, INPUT_DIM + HIDDEN), jnp.float32)
    edge_index = jax.random.randint(k_ei, (2, E), 0, N, jnp.int32)
    edge_length = jax.random.uniform(k_el, (E,), jnp.float32, 0.0, 15.0)  # some > cutoff
    edge_attr = jax.random.normal(k_ea, (E, EDGE_CH), jnp.float32)

    ref = reference_forward(z, edge_index, edge_length, edge_attr, params,
                            input_dim=INPUT_DIM, cutoff=CUTOFF)

    # f32 path (exact vs reference)
    out = ca_schnet_forward(z, edge_index, edge_length, edge_attr, params,
                            input_dim=INPUT_DIM, cutoff=CUTOFF,
                            compute_dtype=jnp.float32)
    out = jax.block_until_ready(out)
    assert out.shape == (N, HIDDEN)
    assert jnp.allclose(out, ref, atol=1e-3, rtol=1e-3), "f32 kernel mismatch vs reference"

    # bf16-on-MXU path (v6e/v7x production setting): f32 accumulation, loose tolerance
    out_bf16 = ca_schnet_forward(z, edge_index, edge_length, edge_attr, params,
                                 input_dim=INPUT_DIM, cutoff=CUTOFF,
                                 compute_dtype=jnp.bfloat16)
    out_bf16 = jax.block_until_ready(out_bf16)
    assert jnp.allclose(out_bf16, ref, atol=1e-1, rtol=1e-1), "bf16 kernel mismatch vs reference"

    print("KERNEL_OK")
</pallas_src>

<mosaic_0001>
module attributes {stable_mosaic.version = 11 : i64} {
  func.func @fused_schnet_kernel(%arg0: i32, %arg1: memref<24xi32, #tpu.memory_space<smem>>, %arg2: memref<24xi32, #tpu.memory_space<smem>>, %arg3: memref<16x128xf32, #tpu.memory_space<vmem>>, %arg4: memref<16x128xf32, #tpu.memory_space<vmem>>, %arg5: memref<128x128xf32, #tpu.memory_space<vmem>>, %arg6: memref<1x128xf32, #tpu.memory_space<vmem>>, %arg7: memref<24x128xf32, #tpu.memory_space<vmem>>, %arg8: memref<24x1xf32, #tpu.memory_space<vmem>>, %arg9: memref<1x128x128xf32, #tpu.memory_space<vmem>>, %arg10: memref<1x1x128xf32, #tpu.memory_space<vmem>>, %arg11: memref<1x128x128xf32, #tpu.memory_space<vmem>>, %arg12: memref<1x1x128xf32, #tpu.memory_space<vmem>>, %arg13: memref<1x128x128xf32, #tpu.memory_space<vmem>>, %arg14: memref<1x128x128xf32, #tpu.memory_space<vmem>>, %arg15: memref<1x1x128xf32, #tpu.memory_space<vmem>>, %arg16: memref<1x128x128xf32, #tpu.memory_space<vmem>>, %arg17: memref<1x1x128xf32, #tpu.memory_space<vmem>>, %arg18: memref<16x128xf32, #tpu.memory_space<vmem>>, %arg19: memref<16x128xf32, #tpu.memory_space<vmem>>, %arg20: memref<24x128xf32, #tpu.memory_space<vmem>>, %arg21: memref<16x128xf32, #tpu.memory_space<vmem>>) attributes {dimension_semantics = [#tpu.dimension_semantics<arbitrary>], iteration_bounds = array<i64: 3>, scalar_prefetch = 2 : i64, scratch_operands = 3 : i64, tpu.core_type = #tpu.core_type<tc>, window_params = [{pipeline_mode = #tpu.pipeline_mode<synchronous>, transform_indices = @transform_0, window_bounds = array<i64: 16, 128>}, {pipeline_mode = #tpu.pipeline_mode<synchronous>, transform_indices = @transform_1, window_bounds = array<i64: 16, 128>}, {pipeline_mode = #tpu.pipeline_mode<synchronous>, transform_indices = @transform_2, window_bounds = array<i64: 128, 128>}, {pipeline_mode = #tpu.pipeline_mode<synchronous>, transform_indices = @transform_3, window_bounds = array<i64: 1, 128>}, {pipeline_mode = #tpu.pipeline_mode<synchronous>, transform_indices = @transform_4, window_bounds = array<i64: 24, 128>}, {pipeline_mode = #tpu.pipeline_mode<synchronous>, transform_indices = @transform_5, window_bounds = array<i64: 24, 1>}, {transform_indices = @transform_6, window_bounds = array<i64: 1, 128, 128>}, {transform_indices = @transform_7, window_bounds = array<i64: 1, 1, 128>}, {transform_indices = @transform_8, window_bounds = array<i64: 1, 128, 128>}, {transform_indices = @transform_9, window_bounds = array<i64: 1, 1, 128>}, {transform_indices = @transform_10, window_bounds = array<i64: 1, 128, 128>}, {transform_indices = @transform_11, window_bounds = array<i64: 1, 128, 128>}, {transform_indices = @transform_12, window_bounds = array<i64: 1, 1, 128>}, {transform_indices = @transform_13, window_bounds = array<i64: 1, 128, 128>}, {transform_indices = @transform_14, window_bounds = array<i64: 1, 1, 128>}, {pipeline_mode = #tpu.pipeline_mode<synchronous>, transform_indices = @transform_15, window_bounds = array<i64: 16, 128>}]} {
    %c0_i32 = arith.constant 0 : i32
    %0 = arith.cmpi eq, %arg0, %c0_i32 : i32
    %1 = arith.extui %0 : i1 to i32
    %c0_i32_0 = arith.constant 0 : i32
    %2 = arith.cmpi ne, %1, %c0_i32_0 : i32
    scf.if %2 {
      %c0_56 = arith.constant 0 : index
      %c0_57 = arith.constant 0 : index
      %67 = vector.load %arg3[%c0_56, %c0_57] : memref<16x128xf32, #tpu.memory_space<vmem>>, vector<16x128xf32>
      %c0_58 = arith.constant 0 : index
      %c0_59 = arith.constant 0 : index
      %68 = vector.load %arg5[%c0_58, %c0_59] : memref<128x128xf32, #tpu.memory_space<vmem>>, vector<128x128xf32>
      %cst_60 = arith.constant dense<0.000000e+00> : vector<16x128xf32>
      %69 = tpu.matmul %67, %68, %cst_60 {dimension_numbers = #tpu.dot_dimension_numbers<[1], [0], [0], [1], [0, 0, 1, 1], [], []>} : vector<16x128xf32>, vector<128x128xf32>, vector<16x128xf32> -> vector<16x128xf32>
      %c0_61 = arith.constant 0 : index
      %c0_62 = arith.constant 0 : index
      %70 = vector.load %arg6[%c0_61, %c0_62] : memref<1x128xf32, #tpu.memory_space<vmem>>, vector<1x128xf32>
      %71 = vector.broadcast %70 : vector<1x128xf32> to vector<16x128xf32>
      %72 = arith.addf %69, %71 : vector<16x128xf32>
      %c0_63 = arith.constant 0 : index
      %c0_64 = arith.constant 0 : index
      %73 = vector.load %arg4[%c0_63, %c0_64] : memref<16x128xf32, #tpu.memory_space<vmem>>, vector<16x128xf32>
      %74 = arith.addf %72, %73 : vector<16x128xf32>
      %c0_65 = arith.constant 0 : index
      %c0_66 = arith.constant 0 : index
      %75 = vector.load %arg18[%c0_65, %c0_66] : memref<16x128xf32, #tpu.memory_space<vmem>>, vector<16x128xf32>
      tpu.vector_store %arg18[%c0_65, %c0_66], %74 {strides = array<i32>} : memref<16x128xf32, #tpu.memory_space<vmem>>, vector<16x128xf32>,
    } else {
    }
    %c0 = arith.constant 0 : index
    %c0_1 = arith.constant 0 : index
    %3 = vector.load %arg7[%c0, %c0_1] : memref<24x128xf32, #tpu.memory_space<vmem>>, vector<24x128xf32>
    %c0_2 = arith.constant 0 : index
    %c0_3 = arith.constant 0 : index
    %c0_4 = arith.constant 0 : index
    %4 = vector.load %arg9[%c0_2, %c0_3, %c0_4] : memref<1x128x128xf32, #tpu.memory_space<vmem>>, vector<1x128x128xf32>
    %5 = vector.shape_cast %4 : vector<1x128x128xf32> to vector<128x128xf32>
    %cst = arith.constant dense<0.000000e+00> : vector<24x128xf32>
    %6 = tpu.matmul %3, %5, %cst {dimension_numbers = #tpu.dot_dimension_numbers<[1], [0], [0], [1], [0, 0, 1, 1], [], []>} : vector<24x128xf32>, vector<128x128xf32>, vector<24x128xf32> -> vector<24x128xf32>
    %c0_5 = arith.constant 0 : index
    %c0_6 = arith.constant 0 : index
    %c0_7 = arith.constant 0 : index
    %7 = vector.load %arg10[%c0_5, %c0_6, %c0_7] : memref<1x1x128xf32, #tpu.memory_space<vmem>>, vector<1x1x128xf32>
    %8 = vector.shape_cast %7 : vector<1x1x128xf32> to vector<1x128xf32>
    %9 = vector.broadcast %8 : vector<1x128xf32> to vector<24x128xf32>
    %10 = arith.addf %6, %9 : vector<24x128xf32>
    %cst_8 = arith.constant 0.000000e+00 : f32
    %11 = vector.broadcast %cst_8 : f32 to vector<24x128xf32>
    %12 = arith.maximumf %10, %11 : vector<24x128xf32>
    %13 = math.absf %10 : vector<24x128xf32>
    %cst_9 = arith.constant 0.000000e+00 : f32
    %14 = vector.broadcast %cst_9 : f32 to vector<24x128xf32>
    %15 = arith.subf %14, %13 : vector<24x128xf32>
    %16 = math.exp %15 : vector<24x128xf32>
    %17 = math.log1p %16 : vector<24x128xf32>
    %18 = arith.addf %12, %17 : vector<24x128xf32>
    %cst_10 = arith.constant 0.693147182 : f32
    %19 = vector.broadcast %cst_10 : f32 to vector<24x128xf32>
    %20 = arith.subf %18, %19 : vector<24x128xf32>
    %c0_11 = arith.constant 0 : index
    %c0_12 = arith.constant 0 : index
    %c0_13 = arith.constant 0 : index
    %21 = vector.load %arg11[%c0_11, %c0_12, %c0_13] : memref<1x128x128xf32, #tpu.memory_space<vmem>>, vector<1x128x128xf32>
    %22 = vector.shape_cast %21 : vector<1x128x128xf32> to vector<128x128xf32>
    %cst_14 = arith.constant dense<0.000000e+00> : vector<24x128xf32>
    %23 = tpu.matmul %20, %22, %cst_14 {dimension_numbers = #tpu.dot_dimension_numbers<[1], [0], [0], [1], [0, 0, 1, 1], [], []>} : vector<24x128xf32>, vector<128x128xf32>, vector<24x128xf32> -> vector<24x128xf32>
    %c0_15 = arith.constant 0 : index
    %c0_16 = arith.constant 0 : index
    %c0_17 = arith.constant 0 : index
    %24 = vector.load %arg12[%c0_15, %c0_16, %c0_17] : memref<1x1x128xf32, #tpu.memory_space<vmem>>, vector<1x1x128xf32>
    %25 = vector.shape_cast %24 : vector<1x1x128xf32> to vector<1x128xf32>
    %26 = vector.broadcast %25 : vector<1x128xf32> to vector<24x128xf32>
    %27 = arith.addf %23, %26 : vector<24x128xf32>
    %c0_18 = arith.constant 0 : index
    %c0_19 = arith.constant 0 : index
    %28 = vector.load %arg8[%c0_18, %c0_19] : memref<24x1xf32, #tpu.memory_space<vmem>>, vector<24x1xf32>
    %29 = vector.broadcast %28 : vector<24x1xf32> to vector<24x128xf32>
    %30 = arith.mulf %27, %29 : vector<24x128xf32>
    %c0_20 = arith.constant 0 : index
    %c0_21 = arith.constant 0 : index
    %31 = vector.load %arg20[%c0_20, %c0_21] : memref<24x128xf32, #tpu.memory_space<vmem>>, vector<24x128xf32>
    tpu.vector_store %arg20[%c0_20, %c0_21], %30 {strides = array<i32>} : memref<24x128xf32, #tpu.memory_space<vmem>>, vector<24x128xf32>,
    %c0_22 = arith.constant 0 : index
    %c0_23 = arith.constant 0 : index
    %32 = vector.load %arg18[%c0_22, %c0_23] : memref<16x128xf32, #tpu.memory_space<vmem>>, vector<16x128xf32>
    %c0_24 = arith.constant 0 : index
    %c0_25 = arith.constant 0 : index
    %c0_26 = arith.constant 0 : index
    %33 = vector.load %arg13[%c0_24, %c0_25, %c0_26] : memref<1x128x128xf32, #tpu.memory_space<vmem>>, vector<1x128x128xf32>
    %34 = vector.shape_cast %33 : vector<1x128x128xf32> to vector<128x128xf32>
    %cst_27 = arith.constant dense<0.000000e+00> : vector<16x128xf32>
    %35 = tpu.matmul %32, %34, %cst_27 {dimension_numbers = #tpu.dot_dimension_numbers<[1], [0], [0], [1], [0, 0, 1, 1], [], []>} : vector<16x128xf32>, vector<128x128xf32>, vector<16x128xf32> -> vector<16x128xf32>
    %c0_28 = arith.constant 0 : index
    %c0_29 = arith.constant 0 : index
    %36 = vector.load %arg19[%c0_28, %c0_29] : memref<16x128xf32, #tpu.memory_space<vmem>>, vector<16x128xf32>
    tpu.vector_store %arg19[%c0_28, %c0_29], %35 {strides = array<i32>} : memref<16x128xf32, #tpu.memory_space<vmem>>, vector<16x128xf32>,
    %cst_30 = arith.constant 0.000000e+00 : f32
    %37 = vector.broadcast %cst_30 : f32 to vector<16x128xf32>
    %c0_31 = arith.constant 0 : index
    %c0_32 = arith.constant 0 : index
    %38 = vector.load %arg21[%c0_31, %c0_32] : memref<16x128xf32, #tpu.memory_space<vmem>>, vector<16x128xf32>
    tpu.vector_store %arg21[%c0_31, %c0_32], %37 {strides = array<i32>} : memref<16x128xf32, #tpu.memory_space<vmem>>, vector<16x128xf32>,
    %c0_i32_33 = arith.constant 0 : i32
    %c24_i32 = arith.constant 24 : i32
    %39 = arith.addi %c0_i32_33, %c24_i32 : i32
    %c1_i32 = arith.constant 1 : i32
    scf.for %arg22 = %c0_i32_33 to %39 step %c1_i32  : i32 {
      %67 = arith.index_cast %arg22 : i32 to index
      %68 = memref.load %arg1[%67] : memref<24xi32, #tpu.memory_space<smem>>
      %69 = arith.index_cast %arg22 : i32 to index
      %70 = memref.load %arg2[%69] : memref<24xi32, #tpu.memory_space<smem>>
      %71 = arith.index_cast %68 : i32 to index
      %c0_56 = arith.constant 0 : index
      %72 = vector.load %arg19[%71, %c0_56] : memref<16x128xf32, #tpu.memory_space<vmem>>, vector<1x128xf32>
      %73 = arith.index_cast %arg22 : i32 to index
      %c0_57 = arith.constant 0 : index
      %74 = vector.load %arg20[%73, %c0_57] : memref<24x128xf32, #tpu.memory_space<vmem>>, vector<1x128xf32>
      %75 = arith.mulf %72, %74 : vector<1x128xf32>
      %76 = arith.index_cast %70 : i32 to index
      %c0_58 = arith.constant 0 : index
      %77 = vector.load %arg21[%76, %c0_58] : memref<16x128xf32, #tpu.memory_space<vmem>>, vector<1x128xf32>
      %78 = arith.addf %77, %75 : vector<1x128xf32>
      %79 = arith.index_cast %70 : i32 to index
      %c0_59 = arith.constant 0 : index
      %80 = vector.load %arg21[%79, %c0_59] : memref<16x128xf32, #tpu.memory_space<vmem>>, vector<1x128xf32>
      tpu.vector_store %arg21[%79, %c0_59], %78 {strides = array<i32>} : memref<16x128xf32, #tpu.memory_space<vmem>>, vector<1x128xf32>,
    }
    %c24_i32_34 = arith.constant 24 : i32
    %c0_35 = arith.constant 0 : index
    %c0_36 = arith.constant 0 : index
    %40 = vector.load %arg21[%c0_35, %c0_36] : memref<16x128xf32, #tpu.memory_space<vmem>>, vector<16x128xf32>
    %c0_37 = arith.constant 0 : index
    %c0_38 = arith.constant 0 : index
    %c0_39 = arith.constant 0 : index
    %41 = vector.load %arg14[%c0_37, %c0_38, %c0_39] : memref<1x128x128xf32, #tpu.memory_space<vmem>>, vector<1x128x128xf32>
    %42 = vector.shape_cast %41 : vector<1x128x128xf32> to vector<128x128xf32>
    %cst_40 = arith.constant dense<0.000000e+00> : vector<16x128xf32>
    %43 = tpu.matmul %40, %42, %cst_40 {dimension_numbers = #tpu.dot_dimension_numbers<[1], [0], [0], [1], [0, 0, 1, 1], [], []>} : vector<16x128xf32>, vector<128x128xf32>, vector<16x128xf32> -> vector<16x128xf32>
    %c0_41 = arith.constant 0 : index
    %c0_42 = arith.constant 0 : index
    %c0_43 = arith.constant 0 : index
    %44 = vector.load %arg15[%c0_41, %c0_42, %c0_43] : memref<1x1x128xf32, #tpu.memory_space<vmem>>, vector<1x1x128xf32>
    %45 = vector.shape_cast %44 : vector<1x1x128xf32> to vector<1x128xf32>
    %46 = vector.broadcast %45 : vector<1x128xf32> to vector<16x128xf32>
    %47 = arith.addf %43, %46 : vector<16x128xf32>
    %cst_44 = arith.constant 0.000000e+00 : f32
    %48 = vector.broadcast %cst_44 : f32 to vector<16x128xf32>
    %49 = arith.maximumf %47, %48 : vector<16x128xf32>
    %50 = math.absf %47 : vector<16x128xf32>
    %cst_45 = arith.constant 0.000000e+00 : f32
    %51 = vector.broadcast %cst_45 : f32 to vector<16x128xf32>
    %52 = arith.subf %51, %50 : vector<16x128xf32>
    %53 = math.exp %52 : vector<16x128xf32>
    %54 = math.log1p %53 : vector<16x128xf32>
    %55 = arith.addf %49, %54 : vector<16x128xf32>
    %cst_46 = arith.constant 0.693147182 : f32
    %56 = vector.broadcast %cst_46 : f32 to vector<16x128xf32>
    %57 = arith.subf %55, %56 : vector<16x128xf32>
    %c0_47 = arith.constant 0 : index
    %c0_48 = arith.constant 0 : index
    %c0_49 = arith.constant 0 : index
    %58 = vector.load %arg16[%c0_47, %c0_48, %c0_49] : memref<1x128x128xf32, #tpu.memory_space<vmem>>, vector<1x128x128xf32>
    %59 = vector.shape_cast %58 : vector<1x128x128xf32> to vector<128x128xf32>
    %cst_50 = arith.constant dense<0.000000e+00> : vector<16x128xf32>
    %60 = tpu.matmul %57, %59, %cst_50 {dimension_numbers = #tpu.dot_dimension_numbers<[1], [0], [0], [1], [0, 0, 1, 1], [], []>} : vector<16x128xf32>, vector<128x128xf32>, vector<16x128xf32> -> vector<16x128xf32>
    %c0_51 = arith.constant 0 : index
    %c0_52 = arith.constant 0 : index
    %c0_53 = arith.constant 0 : index
    %61 = vector.load %arg17[%c0_51, %c0_52, %c0_53] : memref<1x1x128xf32, #tpu.memory_space<vmem>>, vector<1x1x128xf32>
    %62 = vector.shape_cast %61 : vector<1x1x128xf32> to vector<1x128xf32>
    %63 = vector.broadcast %62 : vector<1x128xf32> to vector<16x128xf32>
    %64 = arith.addf %60, %63 : vector<16x128xf32>
    %65 = arith.addf %32, %64 : vector<16x128xf32>
    %c0_54 = arith.constant 0 : index
    %c0_55 = arith.constant 0 : index
    %66 = vector.load %arg18[%c0_54, %c0_55] : memref<16x128xf32, #tpu.memory_space<vmem>>, vector<16x128xf32>
    tpu.vector_store %arg18[%c0_54, %c0_55], %65 {strides = array<i32>} : memref<16x128xf32, #tpu.memory_space<vmem>>, vector<16x128xf32>,
    return
  }
  func.func @transform_0(%arg0: i32, %arg1: memref<24xi32, #tpu.memory_space<smem>>, %arg2: memref<24xi32, #tpu.memory_space<smem>>) -> (i32, i32) {
    %c0_i32 = arith.constant 0 : i32
    %c0_i32_0 = arith.constant 0 : i32
    %c0_i32_1 = arith.constant 0 : i32
    return %c0_i32, %c0_i32_0 : i32, i32
  }
  func.func @transform_1(%arg0: i32, %arg1: memref<24xi32, #tpu.memory_space<smem>>, %arg2: memref<24xi32, #tpu.memory_space<smem>>) -> (i32, i32) {
    %c0_i32 = arith.constant 0 : i32
    %c0_i32_0 = arith.constant 0 : i32
    %c0_i32_1 = arith.constant 0 : i32
    return %c0_i32, %c0_i32_0 : i32, i32
  }
  func.func @transform_2(%arg0: i32, %arg1: memref<24xi32, #tpu.memory_space<smem>>, %arg2: memref<24xi32, #tpu.memory_space<smem>>) -> (i32, i32) {
    %c0_i32 = arith.constant 0 : i32
    %c0_i32_0 = arith.constant 0 : i32
    %c0_i32_1 = arith.constant 0 : i32
    return %c0_i32, %c0_i32_0 : i32, i32
  }
  func.func @transform_3(%arg0: i32, %arg1: memref<24xi32, #tpu.memory_space<smem>>, %arg2: memref<24xi32, #tpu.memory_space<smem>>) -> (i32, i32) {
    %c0_i32 = arith.constant 0 : i32
    %c0_i32_0 = arith.constant 0 : i32
    %c0_i32_1 = arith.constant 0 : i32
    return %c0_i32, %c0_i32_0 : i32, i32
  }
  func.func @transform_4(%arg0: i32, %arg1: memref<24xi32, #tpu.memory_space<smem>>, %arg2: memref<24xi32, #tpu.memory_space<smem>>) -> (i32, i32) {
    %c0_i32 = arith.constant 0 : i32
    %c0_i32_0 = arith.constant 0 : i32
    %c0_i32_1 = arith.constant 0 : i32
    return %c0_i32, %c0_i32_0 : i32, i32
  }
  func.func @transform_5(%arg0: i32, %arg1: memref<24xi32, #tpu.memory_space<smem>>, %arg2: memref<24xi32, #tpu.memory_space<smem>>) -> (i32, i32) {
    %c0_i32 = arith.constant 0 : i32
    %c0_i32_0 = arith.constant 0 : i32
    %c0_i32_1 = arith.constant 0 : i32
    return %c0_i32, %c0_i32_0 : i32, i32
  }
  func.func @transform_6(%arg0: i32, %arg1: memref<24xi32, #tpu.memory_space<smem>>, %arg2: memref<24xi32, #tpu.memory_space<smem>>) -> (i32, i32, i32) {
    %c0_i32 = arith.constant 0 : i32
    %c0_i32_0 = arith.constant 0 : i32
    %c0_i32_1 = arith.constant 0 : i32
    return %arg0, %c0_i32, %c0_i32_0 : i32, i32, i32
  }
  func.func @transform_7(%arg0: i32, %arg1: memref<24xi32, #tpu.memory_space<smem>>, %arg2: memref<24xi32, #tpu.memory_space<smem>>) -> (i32, i32, i32) {
    %c0_i32 = arith.constant 0 : i32
    %c0_i32_0 = arith.constant 0 : i32
    %c0_i32_1 = arith.constant 0 : i32
    return %arg0, %c0_i32, %c0_i32_0 : i32, i32, i32
  }
  func.func @transform_8(%arg0: i32, %arg1: memref<24xi32, #tpu.memory_space<smem>>, %arg2: memref<24xi32, #tpu.memory_space<smem>>) -> (i32, i32, i32) {
    %c0_i32 = arith.constant 0 : i32
    %c0_i32_0 = arith.constant 0 : i32
    %c0_i32_1 = arith.constant 0 : i32
    return %arg0, %c0_i32, %c0_i32_0 : i32, i32, i32
  }
  func.func @transform_9(%arg0: i32, %arg1: memref<24xi32, #tpu.memory_space<smem>>, %arg2: memref<24xi32, #tpu.memory_space<smem>>) -> (i32, i32, i32) {
    %c0_i32 = arith.constant 0 : i32
    %c0_i32_0 = arith.constant 0 : i32
    %c0_i32_1 = arith.constant 0 : i32
    return %arg0, %c0_i32, %c0_i32_0 : i32, i32, i32
  }
  func.func @transform_10(%arg0: i32, %arg1: memref<24xi32, #tpu.memory_space<smem>>, %arg2: memref<24xi32, #tpu.memory_space<smem>>) -> (i32, i32, i32) {
    %c0_i32 = arith.constant 0 : i32
    %c0_i32_0 = arith.constant 0 : i32
    %c0_i32_1 = arith.constant 0 : i32
    return %arg0, %c0_i32, %c0_i32_0 : i32, i32, i32
  }
  func.func @transform_11(%arg0: i32, %arg1: memref<24xi32, #tpu.memory_space<smem>>, %arg2: memref<24xi32, #tpu.memory_space<smem>>) -> (i32, i32, i32) {
    %c0_i32 = arith.constant 0 : i32
    %c0_i32_0 = arith.constant 0 : i32
    %c0_i32_1 = arith.constant 0 : i32
    return %arg0, %c0_i32, %c0_i32_0 : i32, i32, i32
  }
  func.func @transform_12(%arg0: i32, %arg1: memref<24xi32, #tpu.memory_space<smem>>, %arg2: memref<24xi32, #tpu.memory_space<smem>>) -> (i32, i32, i32) {
    %c0_i32 = arith.constant 0 : i32
    %c0_i32_0 = arith.constant 0 : i32
    %c0_i32_1 = arith.constant 0 : i32
    return %arg0, %c0_i32, %c0_i32_0 : i32, i32, i32
  }
  func.func @transform_13(%arg0: i32, %arg1: memref<24xi32, #tpu.memory_space<smem>>, %arg2: memref<24xi32, #tpu.memory_space<smem>>) -> (i32, i32, i32) {
    %c0_i32 = arith.constant 0 : i32
    %c0_i32_0 = arith.constant 0 : i32
    %c0_i32_1 = arith.constant 0 : i32
    return %arg0, %c0_i32, %c0_i32_0 : i32, i32, i32
  }
  func.func @transform_14(%arg0: i32, %arg1: memref<24xi32, #tpu.memory_space<smem>>, %arg2: memref<24xi32, #tpu.memory_space<smem>>) -> (i32, i32, i32) {
    %c0_i32 = arith.constant 0 : i32
    %c0_i32_0 = arith.constant 0 : i32
    %c0_i32_1 = arith.constant 0 : i32
    return %arg0, %c0_i32, %c0_i32_0 : i32, i32, i32
  }
  func.func @transform_15(%arg0: i32, %arg1: memref<24xi32, #tpu.memory_space<smem>>, %arg2: memref<24xi32, #tpu.memory_space<smem>>) -> (i32, i32) {
    %c0_i32 = arith.constant 0 : i32
    %c0_i32_0 = arith.constant 0 : i32
    %c0_i32_1 = arith.constant 0 : i32
    return %c0_i32, %c0_i32_0 : i32, i32
  }
}

</mosaic_0001>

<bundles_post_ra>
// kernel: tpu_custom_call.1
= control target key start
LH: loop header
LB: loop body
LE: loop exit
PB: predicated region body
PF: predicated region fallthrough
CT: control target
= control target key end

     0   :  { %s2037_s30 = smov [#allocation7]   ;;  %s2557_s0 = inlined_call_operand.vmem [shape: s32[24], index: 0, kind: input, shape index: {}]   ;;  %s2558_s2 = inlined_call_operand.hbm [shape: f32[16,128], index: 2, kind: input, shape index: {}]   ;;  %s2559_s3 = inlined_call_operand.hbm [shape: f32[16,128], index: 3, kind: input, shape index: {}]   ;;  %s2560_s4 = inlined_call_operand.hbm [shape: f32[128,128], index: 4, kind: input, shape index: {}]   ;;  %s2561_s5 = inlined_call_operand.hbm [shape: f32[1,128], index: 5, kind: input, shape index: {}]   ;;  %s2562_s6 = inlined_call_operand.vmem [shape: f32[24,128], index: 6, kind: input, shape index: {}]   ;;  %s2563_s7 = inlined_call_operand.vmem [shape: f32[24,1], index: 7, kind: input, shape index: {}]   ;;  %s2564_s8 = inlined_call_operand.hbm [shape: f32[3,128,128], index: 8, kind: input, shape index: {}]   ;;  %s2565_s9 = inlined_call_operand.vmem [shape: f32[3,1,128], index: 9, kind: input, shape index: {}]   ;;  %s2566_s10 = inlined_call_operand.hbm [shape: f32[3,128,128], index: 10, kind: input, shape index: {}]   ;;  %s2567_s11 = inlined_call_operand.vmem [shape: f32[3,1,128], index: 11, kind: input, shape index: {}]   ;;  %s2568_s12 = inlined_call_operand.hbm [shape: f32[3,128,128], index: 12, kind: input, shape index: {}]   ;;  %s2569_s13 = inlined_call_operand.hbm [shape: f32[3,128,128], index: 13, kind: input, shape index: {}]   ;;  %s2570_s14 = inlined_call_operand.vmem [shape: f32[3,1,128], index: 14, kind: input, shape index: {}]   ;;  %s2571_s15 = inlined_call_operand.hbm [shape: f32[3,128,128], index: 15, kind: input, shape index: {}]   ;;  %s2572_s16 = inlined_call_operand.vmem [shape: f32[3,1,128], index: 16, kind: input, shape index: {}]   ;;  %s2573_s17 = inlined_call_operand.hbm [shape: f32[16,128], index: 17, kind: output, shape index: {}]   ;;  %s2574_s1 = inlined_call_operand.hbm [shape: s32[24], index: 1, kind: input, shape index: {}]  }
   0x1   :  { %2584 = sst [smem:[#allocation31_spill]] %s2557_s0  ;;  %s28_s29 = sshll.u32 %s2574_s1, 4  ;;  %s29_s29 = int_to_ptr.hbm [resolvable:$true] %s28_s29 }
   0x2   :  { %2585 = sst [smem:[#allocation32_spill]] %s2558_s2  ;;  %s2036_s0 = smov [#allocation6]  }
   0x3   :  { %2586 = sst [smem:[#allocation33_spill]] %s2562_s6 }
   0x4   :  { %2587 = sst [smem:[#allocation34_spill]] %s2563_s7 }
   0x5   :  { %2588 = sst [smem:[#allocation35_spill]] %s2564_s8 }
   0x6   :  { %2589 = sst [smem:[#allocation36_spill]] %s2565_s9 }
   0x7   :  { %2590 = sst [smem:[#allocation37_spill]] %s2566_s10 }
   0x8   :  { %2591 = sst [smem:[#allocation38_spill]] %s2567_s11 }
   0x9   :  { %2592 = sst [smem:[#allocation39_spill]] %s2570_s14 }
   0xa   :  { %2593 = sst [smem:[#allocation40_spill]] %s2572_s16 }
   0xb   :  { %2594 = sst [smem:[#allocation41_spill]] %s2573_s17 }
   0xc   :  { %s2595_s26 = sld [smem:[#allocation31_spill]] }
  0x12   :  { %s23_s7 = sshll.u32 %s2595_s26, 4  ;;  %s24_s7 = int_to_ptr.vmem [resolvable:$true] %s23_s7 }
  0x13   :  { %26 = dma.vmem_to_smem %s24_s7, 16, %s2036_s0, [#allocation5] }
  0x14   :  { %31 = dma.hbm_to_smem %s29_s29, 16, %s2037_s30, [#allocation5] }
  0x15   :  { %1994 = dma.done.wait [#allocation5], 32 }
  0x16   :  { %1995 = vsyncadd [#allocation5], 4294967264 }
  0x17   :  { %34 = sfence }
  0x18   :  { %35 = vsyncpa [#allocation9], 0 }
  0x19   :  { %36 = vsyncpa [#allocation12], 0 }
  0x1a   :  { %37 = vsyncpa [#allocation15], 0 }
  0x1b   :  { %38 = vsyncpa [#allocation10], 0  ;;  %s2145_s18 = smov 0   ;;  %s2147_s19 = smov 0  }
  0x1c   :  { %s2149_s2 = smov 0   ;;  %s2151_s1 = smov 0  }
  0x1d LB: > { %2596 = sst [smem:[#allocation28_spill]] %s2026_s2  ;;  %s2164_s7 = sadd.s32 4294967295, %s2030_s1   ;;  %s2030_s1 = sphi %s2151_s1, %s2622_s1   ;;  %s2026_s2 = sphi %s2149_s2, %s2624_s2   ;;  %s2022_s19 = sphi %s2147_s19, %s2626_s19   ;;  %s2018_s18 = sphi %s2145_s18, %s2625_s18  }
  0x1e   : > { %s2167_s20 = sadd.s32 1, %s2030_s1   ;;  %s177_s22 = sadd.s32 1, %s2026_s2 }
  0x1f   : > { %2597 = sst [smem:[#allocation29_spill]] %s2167_s20  ;;  %s174_s21 = ssub.s32 %s2030_s1, %s2167_s20 }
  0x20   : > { %p175_p0 = scmp.eq.s32.totalorder %s174_s21, 0  ;;  %p184_p1 = scmp.ne.s32.totalorder %s2026_s2, %s2022_s19 }
  0x21   : > { %p185_p2 = scmp.eq.s32.totalorder %s2030_s1, 0  ;;  %p190_p3 = scmp.ne.s32.totalorder %s2022_s19, %s2018_s18 }
  0x22   : > { %s2177_s23 = scalar_select %p175_p0, %s2026_s2, %s177_s22  }
  0x23   : > { %p2179_p4 = por %p185_p2, %p184_p1  ;;  %p191_p5 = scmp.eq.s32.totalorder %s2164_s7, 0 }
  0x24   : > { %2598 = sst [smem:[#allocation30_spill]] %s2177_s23  ;;  %p1424_p6 = scmp.ge.s32.totalorder %s2030_s1, 1 }
  0x25   : > { %p430_p7 = scmp.lt.s32.totalorder %s2030_s1, 4  ;;  %p2188_p8 = por %p191_p5, %p190_p3 }
  0x26   : > { %p1425_p9 = scmp.ne.s32.totalorder %s2164_s7, 0  ;;  %s2602_s29 = sld [smem:[#allocation32_spill]] }
  0x27   : > { %p2193_p10 = pnand %p1424_p6, %p430_p7  ;;  %s2038_s30 = smov [#allocation8]  }
  0x28   : > { %s443_s18 = sshll.u32 %s2038_s30, 4  ;;  %p1565_p13 = scmp.lt.s32.totalorder %s2030_s1, 3  ;;  %s444_s18 = int_to_ptr.vmem [resolvable:$true] %s443_s18 }
  0x29   : > { %p1532_p11 = pneg %p2193_p10  ;;  %s503_s22 = sand.u32 1, %s2030_s1  }
  0x2a   : > { %s2579_s23 = smov 128   ;;  %s2581_s27 = smov 8  }
  0x2b   : > { %p2204_p12 = pnand %p1532_p11, %p191_p5  ;;  %s505_s28 = sand.u32 1, %s2026_s2  }
  0x2c   : > { %s441_s0 = sshll.u32 %s2602_s29, 4  ;;  %s2216_s29 = sshll.u32 %s505_s28, 7  ;;  %s442_s0 = int_to_ptr.hbm [resolvable:$true] %s441_s0 }
  0x2d   : > { %1535 = dma.hbm_to_vmem [thread:$0]  (!%p2204_p12), %s442_s0, 256, %s444_s18, [#allocation9], %s2579_s23, %s2579_s23, %s2581_s27  }
  0x2e   : > { %s2219_s30 = sshll.u32 %s2030_s1, 7  ;;  %s2604_s8 = sld [smem:[#allocation35_spill]] }
  0x2f   : > { %s507_s14 = scalar_lea.vmem [#allocation16], %s2216_s29  ;;  %p2233_p0 = pnand %p1565_p13, %p2179_p4 }
  0x30   : > { %s515_s11 = sshll.u32 %s507_s14, 4  ;;  %s2606_s10 = sld [smem:[#allocation37_spill]]  ;;  %s516_s11 = int_to_ptr.vmem [resolvable:$true] %s515_s11 }
  0x31   : > { %s535_s20 = scalar_lea.vmem [#allocation17], %s2216_s29  ;;  %s2246_s27 = scalar_lea.sflag [#allocation9], %s503_s22 }
  0x32   : > { %s2242_s23 = sshll.u32 %s535_s20, 4  ;;  %p2250_p2 = pneg %p2233_p0  ;;  %s544_s23 = int_to_ptr.vmem [resolvable:$true] %s2242_s23 }
  0x34   : > { %s512_s6 = scalar_lea.hbm %s2604_s8, %s2219_s30 }
  0x35   : > { %s2225_s16 = sshll.u32 %s512_s6, 4  ;;  %s514_s16 = int_to_ptr.hbm [resolvable:$true] %s2225_s16 }
  0x36   : > { %s540_s17 = scalar_lea.hbm %s2606_s10, %s2219_s30  ;;  %s1706_s14 = sshra.s32 %s514_s16, 4  ;;  %s1707_s14 = int_to_ptr.hbm [resolvable:$true] %s1706_s14 }
  0x37   : > { %s2244_s6 = sshll.u32 %s540_s17, 4  ;;  %s1708_s24 = scalar_lea.hbm %s1707_s14, 128  ;;  %s542_s6 = int_to_ptr.hbm [resolvable:$true] %s2244_s6 }
  0x38   : > { %p1709_p1 = scmp.ne.s32.totalorder %s1707_s14, %s1708_s24  ;;  %s1713_s17 = scalar_lea.hbm %s2604_s8, 384 }
  0x39   : > { %p1714_p6 = scmp.lt.s32.totalorder %s1707_s14, %s2604_s8  ;;  %p1715_p7 = scmp.lt.s32.totalorder %s1713_s17, %s1708_s24 }
  0x3a   : > { %p1711_p3 = pnand %p2250_p2, %p1709_p1 }
  0x3b   : > { %p1716_p11 = por %p1715_p7, %p1714_p6 }
  0x3c   : > { %p1712_p4 = pneg %p1711_p3 }
  0x3e   : > { %p1717_p13 = pnand %p1716_p11, %p1712_p4 }
  0x40   : > { %1720 = shalt.err (!%p1717_p13)
}
  0x41   : > { %s2608_s2 = smov 8   ;;  %s2609_s9 = smov 128  }
  0x42   : > { %1548 = dma.hbm_to_vmem [thread:$0]  (!%p2233_p0), %s514_s16, 2048, %s516_s11, %s2246_s27, %s2609_s9, %s2609_s9, %s2608_s2  }
  0x43   : > { %s1736_s18 = sshra.s32 %s542_s6, 4  ;;  %s1743_s17 = scalar_lea.hbm %s2606_s10, 384  ;;  %s1737_s18 = int_to_ptr.hbm [resolvable:$true] %s1736_s18 }
  0x44   : > { %s1738_s28 = scalar_lea.hbm %s1737_s18, 128  ;;  %p1744_p6 = scmp.lt.s32.totalorder %s1737_s18, %s2606_s10 }
  0x45   : > { %p1739_p1 = scmp.ne.s32.totalorder %s1737_s18, %s1738_s28  ;;  %p1745_p7 = scmp.lt.s32.totalorder %s1743_s17, %s1738_s28 }
  0x47   : > { %p1741_p3 = pnand %p1739_p1, %p2250_p2  ;;  %p1746_p11 = por %p1745_p7, %p1744_p6 }
  0x49   : > { %p1742_p4 = pneg %p1741_p3 }
  0x4b   : > { %p1747_p13 = pnand %p1746_p11, %p1742_p4 }
  0x4d   : > { %1750 = shalt.err (!%p1747_p13)
}
  0x4e   : > { %1551 = dma.hbm_to_vmem [thread:$0]  (!%p2233_p0), %s542_s6, 2048, %s544_s23, %s2246_s27, %s2609_s9, %s2609_s9, %s2608_s2  }
  0x4f   : > { %s568_s14 = scalar_lea.hbm %s2568_s12, %s2219_s30  ;;  %s563_s18 = scalar_lea.vmem [#allocation18], %s2216_s29 }
  0x50   : > { %s569_s24 = sshll.u32 %s568_s14, 4  ;;  %s571_s28 = sshll.u32 %s563_s18, 4  ;;  %s570_s24 = int_to_ptr.hbm [resolvable:$true] %s569_s24  ;;  %s572_s28 = int_to_ptr.vmem [resolvable:$true] %s571_s28 }
  0x51   : > { %s1766_s17 = sshra.s32 %s570_s24, 4  ;;  %s1773_s23 = scalar_lea.hbm %s2568_s12, 384  ;;  %s1767_s17 = int_to_ptr.hbm [resolvable:$true] %s1766_s17 }
  0x52   : > { %s1768_s20 = scalar_lea.hbm %s1767_s17, 128  ;;  %p1774_p6 = scmp.lt.s32.totalorder %s1767_s17, %s2568_s12 }
  0x53   : > { %p1769_p1 = scmp.ne.s32.totalorder %s1767_s17, %s1768_s20  ;;  %p1775_p7 = scmp.lt.s32.totalorder %s1773_s23, %s1768_s20 }
  0x55   : > { %p1771_p3 = pnand %p1769_p1, %p2250_p2  ;;  %p1776_p11 = por %p1775_p7, %p1774_p6 }
  0x57   : > { %p1772_p4 = pneg %p1771_p3 }
  0x59   : > { %p1777_p13 = pnand %p1776_p11, %p1772_p4 }
  0x5b   : > { %1780 = shalt.err (!%p1777_p13)
}
  0x5c   : > { %1554 = dma.hbm_to_vmem [thread:$0]  (!%p2233_p0), %s570_s24, 2048, %s572_s28, %s2246_s27, %s2609_s9, %s2609_s9, %s2608_s2  }
  0x5d   : > { %s455_s16 = sshll.u32 %s2559_s3, 4  ;;  %s2041_s10 = smov [#allocation11]   ;;  %s456_s16 = int_to_ptr.hbm [resolvable:$true] %s455_s16 }
  0x5e   : > { %s457_s14 = sshll.u32 %s2041_s10, 4  ;;  %s590_s20 = scalar_lea.hbm %s2569_s13, %s2219_s30  ;;  %s458_s14 = int_to_ptr.vmem [resolvable:$true] %s457_s14 }
  0x5f   : > { %1538 = dma.hbm_to_vmem [thread:$0]  (!%p2204_p12), %s456_s16, 256, %s458_s14, [#allocation12], %s2609_s9, %s2609_s9, %s2608_s2  }
  0x60   : > { %s585_s22 = scalar_lea.vmem [#allocation19], %s2216_s29  ;;  %s591_s28 = sshll.u32 %s590_s20, 4  ;;  %s592_s28 = int_to_ptr.hbm [resolvable:$true] %s591_s28 }
  0x61   : > { %s593_s24 = sshll.u32 %s585_s22, 4  ;;  %s469_s8 = sshll.u32 %s2560_s4, 4  ;;  %s594_s24 = int_to_ptr.vmem [resolvable:$true] %s593_s24  ;;  %s470_s8 = int_to_ptr.hbm [resolvable:$true] %s469_s8 }
  0x62   : > { %s1826_s11 = sshra.s32 %s592_s28, 4  ;;  %s1833_s18 = scalar_lea.hbm %s2569_s13, 384  ;;  %s1827_s11 = int_to_ptr.hbm [resolvable:$true] %s1826_s11 }
  0x63   : > { %s1828_s10 = scalar_lea.hbm %s1827_s11, 128  ;;  %p1834_p6 = scmp.lt.s32.totalorder %s1827_s11, %s2569_s13 }
  0x64   : > { %p1829_p1 = scmp.ne.s32.totalorder %s1827_s11, %s1828_s10  ;;  %p1835_p7 = scmp.lt.s32.totalorder %s1833_s18, %s1828_s10 }
  0x66   : > { %p1831_p3 = pnand %p1829_p1, %p2250_p2  ;;  %p1836_p11 = por %p1835_p7, %p1834_p6 }
  0x68   : > { %p1832_p4 = pneg %p1831_p3 }
  0x6a   : > { %p1837_p13 = pnand %p1836_p11, %p1832_p4 }
  0x6c   : > { %1840 = shalt.err (!%p1837_p13)
}
  0x6d   : > { %1557 = dma.hbm_to_vmem [thread:$0]  (!%p2233_p0), %s592_s28, 2048, %s594_s24, %s2246_s27, %s2609_s9, %s2609_s9, %s2608_s2  }
  0x6e   : > { %s2042_s20 = smov [#allocation13]   ;;  %s484_s10 = sshll.u32 %s2561_s5, 4  ;;  %s485_s10 = int_to_ptr.hbm [resolvable:$true] %s484_s10 }
  0x6f   : > { %s471_s23 = sshll.u32 %s2042_s20, 4  ;;  %s2043_s16 = smov [#allocation14]   ;;  %s472_s23 = int_to_ptr.vmem [resolvable:$true] %s471_s23 }
  0x70   : > { %1541 = dma.hbm_to_vmem [thread:$0]  (!%p2204_p12), %s470_s8, 2048, %s472_s23, [#allocation12], %s2609_s9, %s2609_s9, %s2608_s2  }
  0x71   : > { %s486_s14 = sshll.u32 %s2043_s16, 4  ;;  %s618_s24 = scalar_lea.hbm %s2571_s15, %s2219_s30  ;;  %s487_s14 = int_to_ptr.vmem [resolvable:$true] %s486_s14 }
  0x72   : > { %s619_s28 = sshll.u32 %s618_s24, 4  ;;  %s613_s22 = scalar_lea.vmem [#allocation20], %s2216_s29  ;;  %s620_s28 = int_to_ptr.hbm [resolvable:$true] %s619_s28 }
  0x73   : > { %1544 = dma.hbm_to_vmem [thread:$0]  (!%p2204_p12), %s485_s10, 16, %s487_s14, [#allocation15]  }
  0x74   : > { %s621_s20 = sshll.u32 %s613_s22, 4  ;;  %s1916_s6 = sshra.s32 %s620_s28, 4  ;;  %s622_s20 = int_to_ptr.vmem [resolvable:$true] %s621_s20  ;;  %s1917_s6 = int_to_ptr.hbm [resolvable:$true] %s1916_s6 }
  0x75   : > { %s1918_s11 = scalar_lea.hbm %s1917_s6, 128  ;;  %s1923_s16 = scalar_lea.hbm %s2571_s15, 384 }
  0x76   : > { %p1919_p1 = scmp.ne.s32.totalorder %s1917_s6, %s1918_s11  ;;  %p1924_p6 = scmp.lt.s32.totalorder %s1917_s6, %s2571_s15 }
  0x77   : > { %p1925_p12 = scmp.lt.s32.totalorder %s1923_s16, %s1918_s11 }
  0x78   : > { %p1921_p3 = pnand %p1919_p1, %p2250_p2 }
  0x79   : > { %p1926_p7 = por %p1925_p12, %p1924_p6 }
  0x7a   : > { %p1922_p4 = pneg %p1921_p3 }
  0x7c   : > { %p1927_p11 = pnand %p1926_p7, %p1922_p4 }
  0x7e   : > { %1930 = shalt.err (!%p1927_p11)
}
  0x7f   : > { %1560 = dma.hbm_to_vmem [thread:$0]  (!%p2233_p0), %s620_s28, 2048, %s622_s20, %s2246_s27, %s2609_s9, %s2609_s9, %s2608_s2  }
  0x80   : > { %639 = sbr.rel (%p2193_p10) target bundleno = 999 (0x3e7), region = 80 }
  0x85   : > { %1997 = dma.done.wait (%p191_p5), [#allocation9], 256  }
  0x86   : > { %1999 = vsyncadd (%p191_p5), [#allocation9], 4294967040 }
  0x87   : > { %2001 = dma.done.wait (%p191_p5), [#allocation12], 2304  }
  0x88   : > { %2003 = vsyncadd (%p191_p5), [#allocation12], 4294964992 }
  0x89   : > { %2005 = dma.done.wait (%p191_p5), [#allocation15], 16  }
  0x8a   : > { %2007 = vsyncadd (%p191_p5), [#allocation15], 4294967280  ;;  %s661_s9 = sand.u32 1, %s2164_s7   ;;  %s663_s2 = sand.u32 1, %s2022_s19  }
  0x8b   : > { %s1450_s26 = sshll.u32 %s663_s2, 7  ;;  %s662_s21 = scalar_lea.sflag [#allocation9], %s661_s9 }
  0x8c   : > { %s2378_s27 = scalar_lea.vmem [#allocation16], %s1450_s26 }
  0x8d   : > { %2009 = dma.done.wait (%p2188_p8), %s662_s21, 10240  }
  0x8e   : > { %2011 = vsyncadd (%p2188_p8), %s662_s21, 4294957056  ;;  %p780_p10 = scmp.lt.s32.totalorder %s2164_s7, 2  ;;  %s2610_s10 = sld [smem:[#allocation36_spill]] }
  0x8f   : > { %s2611_s28 = sld [smem:[#allocation38_spill]]  ;;  %s2404_s18 = scalar_lea.vmem [#allocation17], %s1450_s26 }
  0x90   : > { %s2386_s29 = scalar_select %p780_p10, %s2164_s7, 2 }
  0x91   : > { %s2612_s6 = sld [smem:[#allocation39_spill]]  ;;  %s2406_s9 = scalar_lea.vmem [#allocation18], %s1450_s26 }
  0x92   : > { %s2613_s16 = sld [smem:[#allocation40_spill]]  ;;  %s2408_s2 = scalar_lea.vmem [#allocation19], %s1450_s26 }
  0x93   : > { %s2410_s21 = scalar_lea.vmem [#allocation20], %s1450_s26 }
  0x94   : > { %s782_s14 = scalar_lea.vmem %s2610_s10, %s2386_s29  ;;  %795 = sbr.rel (%p1425_p9) target bundleno = 317 (0x13d), region = 120 }
  0x95   : > { %s785_s22 = scalar_lea.vmem %s2611_s28, %s2386_s29 }
  0x97   : > { %s788_s11 = scalar_lea.vmem %s2612_s6, %s2386_s29 }
  0x98   : > { %s791_s30 = scalar_lea.vmem %s2613_s16, %s2386_s29 }
  0x99   : > { %v813_v0 = vld [vmem:[#allocation13 + $0x78] sm:$0xff]  ;;  %v812_v1 = vld [vmem:[#allocation13 + $0x70] sm:$0xff]  ;;  %v811_v2 = vld [vmem:[#allocation13 + $0x68] sm:$0xff] }
  0x9a   : > { %818 = vmatpush.msra.mxu0 %v813_v0  ;;  %1470 = vmatpush.msra.mxu1 %v813_v0  ;;  %v810_v3 = vld [vmem:[#allocation13 + $0x60] sm:$0xff]  ;;  %v809_v4 = vld [vmem:[#allocation13 + $0x58] sm:$0xff]  ;;  %v808_v5 = vld [vmem:[#allocation13 + $0x50] sm:$0xff] }
  0x9b   : > { %v807_v6 = vld [vmem:[#allocation13 + $0x48] sm:$0xff]  ;;  %v806_v7 = vld [vmem:[#allocation13 + $0x40] sm:$0xff]  ;;  %v805_v8 = vld [vmem:[#allocation13 + $0x38] sm:$0xff] }
  0x9c   : > { %819 = vmatpush.msra.mxu0 %v812_v1  ;;  %1471 = vmatpush.msra.mxu1 %v812_v1  ;;  %v804_v9 = vld [vmem:[#allocation13 + $0x30] sm:$0xff]  ;;  %v803_v10 = vld [vmem:[#allocation13 + $0x28] sm:$0xff]  ;;  %v802_v11 = vld [vmem:[#allocation13 + $0x20] sm:$0xff] }
  0x9d   : > { %v801_v12 = vld [vmem:[#allocation13 + $0x18] sm:$0xff]  ;;  %v800_v13 = vld [vmem:[#allocation13 + $0x10] sm:$0xff]  ;;  %v799_v14 = vld [vmem:[#allocation13 + $0x8] sm:$0xff] }
  0x9e   : > { %820 = vmatpush.msra.mxu0 %v811_v2  ;;  %1472 = vmatpush.msra.mxu1 %v811_v2  ;;  %v798_v15 = vld [vmem:[#allocation13] sm:$0xff]  ;;  %v797_v17 = vld [vmem:[#allocation8 + $0x8] sm:$0xff]  ;;  %v841_v20 = vld [vmem:[#allocation11] sm:$0xff] }
  0x9f   : > { %v796_v16 = vld [vmem:[#allocation8] sm:$0xff]  ;;  %v842_v22 = vld [vmem:[#allocation11 + $0x8] sm:$0xff] }
  0xa0   : > { %821 = vmatpush.msra.mxu0 %v810_v3  ;;  %1473 = vmatpush.msra.mxu1 %v810_v3  ;;  %v1625_v18 = vld [vmem:[#allocation14] ss:$0 sm:$0xff] }
  0xa2   : > { %822 = vmatpush.msra.mxu0 %v809_v4  ;;  %1474 = vmatpush.msra.mxu1 %v809_v4 }
  0xa4   : > { %823 = vmatpush.msra.mxu0 %v808_v5  ;;  %1475 = vmatpush.msra.mxu1 %v808_v5 }
  0xa6   : > { %824 = vmatpush.msra.mxu0 %v807_v6  ;;  %1476 = vmatpush.msra.mxu1 %v807_v6 }
  0xa8   : > { %825 = vmatpush.msra.mxu0 %v806_v7  ;;  %1477 = vmatpush.msra.mxu1 %v806_v7 }
  0xaa   : > { %826 = vmatpush.msra.mxu0 %v805_v8  ;;  %1478 = vmatpush.msra.mxu1 %v805_v8 }
  0xac   : > { %827 = vmatpush.msra.mxu0 %v804_v9  ;;  %1479 = vmatpush.msra.mxu1 %v804_v9 }
  0xae   : > { %828 = vmatpush.msra.mxu0 %v803_v10  ;;  %1480 = vmatpush.msra.mxu1 %v803_v10 }
  0xb0   : > { %829 = vmatpush.msra.mxu0 %v802_v11  ;;  %1481 = vmatpush.msra.mxu1 %v802_v11 }
  0xb2   : > { %830 = vmatpush.msra.mxu0 %v801_v12  ;;  %1482 = vmatpush.msra.mxu1 %v801_v12 }
  0xb4   : > { %831 = vmatpush.msra.mxu0 %v800_v13  ;;  %1483 = vmatpush.msra.mxu1 %v800_v13 }
  0xb6   : > { %832 = vmatpush.msra.mxu0 %v799_v14  ;;  %1484 = vmatpush.msra.mxu1 %v799_v14 }
  0xb8   : > { %833 = vmatpush.msra.mxu0 %v798_v15  ;;  %1485 = vmatpush.msra.mxu1 %v798_v15 }
  0xb9   : > { %834 = vmatmul.f32.vlgmr.msra.gmra.mxu0 %v796_v16  ;;  %837 = vmatmul.f32.vlgmr.msra.gmra.mxu1 %v797_v17 }
 0x136   : > { %v835_v19 = vpop.f32.mrf.mxu0  ;;  %v838_v21 = vpop.f32.mrf.mxu1 }
 0x137   : > { %v836_v23 = vadd.f32 %v1625_v18, %v835_v19  ;;  %v839_v24 = vadd.f32 %v1625_v18, %v838_v21 }
 0x139   : > { %v843_v25 = vadd.f32 %v841_v20, %v836_v23  ;;  %v844_v26 = vadd.f32 %v842_v22, %v839_v24 }
 0x13b   : > { %845 = vst [vmem:[#allocation21] sm:$0xff] %v843_v25 }
 0x13c   : > { %846 = vst [vmem:[#allocation21 + $0x8] sm:$0xff] %v844_v26 }
 0x13d PF: > { %v865_v27 = vld [vmem:[%s2378_s27 + $0x78] sm:$0xff]  ;;  %v864_v28 = vld [vmem:[%s2378_s27 + $0x70] sm:$0xff]  ;;  %v863_v29 = vld [vmem:[%s2378_s27 + $0x68] sm:$0xff]  ;;  %s2614_s1 = sld [smem:[#allocation33_spill]]  ;;  %v2044_v24 = vmov 0   ;;  %s2032_s24 = smov 0  }
 0x13e   : > { %870 = vmatpush.msra.mxu0 %v865_v27  ;;  %v862_v30 = vld [vmem:[%s2378_s27 + $0x60] sm:$0xff]  ;;  %v861_v31 = vld [vmem:[%s2378_s27 + $0x58] sm:$0xff]  ;;  %v860_v32 = vld [vmem:[%s2378_s27 + $0x50] sm:$0xff]  ;;  %s2617_s23 = sld [smem:[#allocation34_spill]]  ;;  %1626 = vset.pattern.permute.xlu0 %v2044_v24 }
 0x13f   : > { %v859_v33 = vld [vmem:[%s2378_s27 + $0x48] sm:$0xff]  ;;  %v858_v34 = vld [vmem:[%s2378_s27 + $0x40] sm:$0xff]  ;;  %v857_v35 = vld [vmem:[%s2378_s27 + $0x38] sm:$0xff]  ;;  %1627 = vset.pattern.permute.xlu1 %v2044_v24 }
 0x140   : > { %871 = vmatpush.msra.mxu0 %v864_v28  ;;  %v856_v36 = vld [vmem:[%s2378_s27 + $0x30] sm:$0xff]  ;;  %v855_v37 = vld [vmem:[%s2378_s27 + $0x28] sm:$0xff]  ;;  %v854_v38 = vld [vmem:[%s2378_s27 + $0x20] sm:$0xff] }
 0x141   : > { %v853_v39 = vld [vmem:[%s2378_s27 + $0x18] sm:$0xff]  ;;  %v852_v40 = vld [vmem:[%s2378_s27 + $0x10] sm:$0xff]  ;;  %v851_v41 = vld [vmem:[%s2378_s27 + $0x8] sm:$0xff] }
 0x142   : > { %872 = vmatpush.msra.mxu0 %v863_v29  ;;  %v850_v42 = vld [vmem:[%s2378_s27] sm:$0xff]  ;;  %v959_v46 = vld [vmem:[%s2404_s18 + $0x78] sm:$0xff]  ;;  %v958_v47 = vld [vmem:[%s2404_s18 + $0x70] sm:$0xff] }
 0x143   : > { %s2615_s10 = smov %s2614_s1  ;;  %v847_v43 = vld [vmem:[%s2614_s1] sm:$0xff]  ;;  %964 = vmatpush.msra.mxu1 %v959_v46  ;;  %v1031_v50 = vld [vmem:[%s2406_s9 + $0x78] sm:$0xff]  ;;  %v1030_v52 = vld [vmem:[%s2406_s9 + $0x70] sm:$0xff] }
 0x144   : > { %873 = vmatpush.msra.mxu0 %v862_v30  ;;  %v848_v44 = vld [vmem:[%s2615_s10 + $0x8] sm:$0xff]  ;;  %v849_v45 = vld [vmem:[%s2615_s10 + $0x10] sm:$0xff]  ;;  %v956_v49 = vld [vmem:[%s2404_s18 + $0x60] sm:$0xff]  ;;  %1032 = vmatpush.msra.mxu2 %v1031_v50 }
 0x145   : > { %965 = vmatpush.msra.mxu1 %v958_v47  ;;  %v957_v48 = vld [vmem:[%s2404_s18 + $0x68] sm:$0xff]  ;;  %v955_v51 = vld [vmem:[%s2404_s18 + $0x58] sm:$0xff]  ;;  %v954_v53 = vld [vmem:[%s2404_s18 + $0x50] sm:$0xff] }
 0x146   : > { %874 = vmatpush.msra.mxu0 %v861_v31  ;;  %1033 = vmatpush.msra.mxu2 %v1030_v52  ;;  %v1029_v54 = vld [vmem:[%s2406_s9 + $0x68] sm:$0xff]  ;;  %v1028_v56 = vld [vmem:[%s2406_s9 + $0x60] sm:$0xff]  ;;  %v1027_v58 = vld [vmem:[%s2406_s9 + $0x58] sm:$0xff] }
 0x147   : > { %966 = vmatpush.msra.mxu1 %v957_v48  ;;  %v953_v55 = vld [vmem:[%s2404_s18 + $0x48] sm:$0xff]  ;;  %v952_v57 = vld [vmem:[%s2404_s18 + $0x40] sm:$0xff]  ;;  %v951_v59 = vld [vmem:[%s2404_s18 + $0x38] sm:$0xff] }
 0x148   : > { %875 = vmatpush.msra.mxu0 %v860_v32  ;;  %1034 = vmatpush.msra.mxu2 %v1029_v54  ;;  %v1026_v60 = vld [vmem:[%s2406_s9 + $0x50] sm:$0xff]  ;;  %v1025_v62 = vld [vmem:[%s2406_s9 + $0x48] sm:$0xff]  ;;  %v1024_v0 = vld [vmem:[%s2406_s9 + $0x40] sm:$0xff] }
 0x149   : > { %967 = vmatpush.msra.mxu1 %v956_v49  ;;  %v950_v61 = vld [vmem:[%s2404_s18 + $0x30] sm:$0xff]  ;;  %v949_v63 = vld [vmem:[%s2404_s18 + $0x28] sm:$0xff]  ;;  %v948_v1 = vld [vmem:[%s2404_s18 + $0x20] sm:$0xff] }
 0x14a   : > { %876 = vmatpush.msra.mxu0 %v859_v33  ;;  %1035 = vmatpush.msra.mxu2 %v1028_v56  ;;  %v1023_v2 = vld [vmem:[%s2406_s9 + $0x38] sm:$0xff]  ;;  %v1022_v4 = vld [vmem:[%s2406_s9 + $0x30] sm:$0xff]  ;;  %v1021_v6 = vld [vmem:[%s2406_s9 + $0x28] sm:$0xff] }
 0x14b   : > { %968 = vmatpush.msra.mxu1 %v955_v51  ;;  %v947_v3 = vld [vmem:[%s2404_s18 + $0x18] sm:$0xff]  ;;  %v946_v5 = vld [vmem:[%s2404_s18 + $0x10] sm:$0xff]  ;;  %v945_v7 = vld [vmem:[%s2404_s18 + $0x8] sm:$0xff] }
 0x14c   : > { %877 = vmatpush.msra.mxu0 %v858_v34  ;;  %1036 = vmatpush.msra.mxu2 %v1027_v58  ;;  %v1020_v8 = vld [vmem:[%s2406_s9 + $0x20] sm:$0xff]  ;;  %v1019_v10 = vld [vmem:[%s2406_s9 + $0x18] sm:$0xff]  ;;  %v1018_v13 = vld [vmem:[%s2406_s9 + $0x10] sm:$0xff] }
 0x14d   : > { %969 = vmatpush.msra.mxu1 %v954_v53  ;;  %v944_v9 = vld [vmem:[%s2404_s18] sm:$0xff]  ;;  %v1017_v14 = vld [vmem:[%s2406_s9 + $0x8] sm:$0xff]  ;;  %v992_v33 = vld [vmem:[%s2617_s23 + $0x10] sm:$0xff] }
 0x14e   : > { %878 = vmatpush.msra.mxu0 %v857_v35  ;;  %1037 = vmatpush.msra.mxu2 %v1026_v60  ;;  %v1628_v11 = vld [vmem:[%s782_s14] ss:$0 sm:$0xff]  ;;  %v2482_v26 = vld [vmem:[#allocation21 + $0x8] sm:$0xff] }
 0x14f   : > { %970 = vmatpush.msra.mxu1 %v953_v55  ;;  %v1016_v16 = vld [vmem:[%s2406_s9] sm:$0xff]  ;;  %v991_v32 = vld [vmem:[%s2617_s23 + $0x8] sm:$0xff]  ;;  %1005 = vperm.xlu1 %1627, %v992_v33  }
 0x150   : > { %879 = vmatpush.msra.mxu0 %v856_v36  ;;  %1038 = vmatpush.msra.mxu2 %v1025_v62  ;;  %v2476_v18 = vld [vmem:[#allocation21] sm:$0xff] }
 0x151   : > { %971 = vmatpush.msra.mxu1 %v952_v57  ;;  %v990_v22 = vld [vmem:[%s2617_s23] sm:$0xff] }
 0x152   : > { %880 = vmatpush.msra.mxu0 %v855_v37  ;;  %1039 = vmatpush.msra.mxu2 %v1024_v0 }
 0x153   : > { %972 = vmatpush.msra.mxu1 %v951_v59  ;;  %995 = vperm.xlu0 %1626, %v990_v22  }
 0x154   : > { %881 = vmatpush.msra.mxu0 %v854_v38  ;;  %1040 = vmatpush.msra.mxu2 %v1023_v2 }
 0x155   : > { %973 = vmatpush.msra.mxu1 %v950_v61 }
 0x156   : > { %882 = vmatpush.msra.mxu0 %v853_v39  ;;  %1041 = vmatpush.msra.mxu2 %v1022_v4 }
 0x157   : > { %974 = vmatpush.msra.mxu1 %v949_v63 }
 0x158   : > { %883 = vmatpush.msra.mxu0 %v852_v40  ;;  %1042 = vmatpush.msra.mxu2 %v1021_v6 }
 0x159   : > { %975 = vmatpush.msra.mxu1 %v948_v1 }
 0x15a   : > { %884 = vmatpush.msra.mxu0 %v851_v41  ;;  %1043 = vmatpush.msra.mxu2 %v1020_v8 }
 0x15b   : > { %976 = vmatpush.msra.mxu1 %v947_v3  ;;  %1000 = vperm.xlu0 %1626, %v991_v32  }
 0x15c   : > { %885 = vmatpush.msra.mxu0 %v850_v42  ;;  %1044 = vmatpush.msra.mxu2 %v1019_v10  ;;  %v2045_v10 = vmov 0.0  }
 0x15d   : > { %886 = vmatmul.f32.vlgmr.msra.gmra.mxu0 %v847_v43  ;;  %977 = vmatpush.msra.mxu1 %v946_v5  ;;  %1057 = vst [vmem:[#allocation4] sm:$0xff] %v2045_v10 }
 0x15e   : > { %1045 = vmatpush.msra.mxu2 %v1018_v13  ;;  %1058 = vst [vmem:[#allocation4 + $0x8] sm:$0xff] %v2045_v10 }
 0x15f   : > { %978 = vmatpush.msra.mxu1 %v945_v7 }
 0x160   : > { %1046 = vmatpush.msra.mxu2 %v1017_v14 }
 0x161   : > { %979 = vmatpush.msra.mxu1 %v944_v9 }
 0x162   : > { %1047 = vmatpush.msra.mxu2 %v1016_v16 }
 0x163   : > { %1048 = vmatmul.f32.vlgmr.msra.gmra.mxu2 %v2476_v18 }
 0x165   : > { %889 = vmatmul.f32.gmra.mxu0 %v848_v44 }
 0x16b   : > { %1051 = vmatmul.f32.gmra.mxu2 %v2482_v26 }
 0x16d   : > { %892 = vmatmul.f32.gmra.mxu0 %v849_v45 }
 0x1c1   : > { %v1006_v22 = vpop.permute.xlu1 %1005 }
 0x1da   : > { %v887_v12 = vpop.f32.mrf.mxu0 }
 0x1db   : > { %v888_v15 = vadd.f32 %v1628_v11, %v887_v12  ;;  %v996_v12 = vpop.permute.xlu0 %995 }
 0x1dd   : > { %v899_v17 = vand.u32 2147483647, %v888_v15  ;;  %v896_v47 = vmax.f32 %v888_v15, 0.0 }
 0x1df   : > { %v902_v19 = vsub.f32 0.0, %v899_v17 }
 0x1e1   : > { %v905_v20 = vmul.f32 1.442695, %v902_v19 }
 0x1e2   : > { %v890_v21 = vpop.f32.mrf.mxu0 }
 0x1e3   : > { %1630 = vpow2.f32 %v905_v20  ;;  %v891_v23 = vadd.f32 %v1628_v11, %v890_v21  ;;  %v1001_v17 = vpop.permute.xlu0 %1000 }
 0x1e5   : > { %v900_v25 = vand.u32 2147483647, %v891_v23  ;;  %v897_v59 = vmax.f32 %v891_v23, 0.0 }
 0x1e6   : > { %v1049_v8 = vpop.f32.mrf.mxu2 }
 0x1e7   : > { %v903_v27 = vsub.f32 0.0, %v900_v25  ;;  %1055 = vst [vmem:[#allocation2] sm:$0xff] %v1049_v8 }
 0x1e9   : > { %v1631_v28 = vpop.eup %1630  ;;  %v907_v29 = vmul.f32 1.442695, %v903_v27 }
 0x1ea   : > { %v893_v30 = vpop.f32.mrf.mxu0  ;;  %v911_v31 = vadd.f32 1.0, %v1631_v28  ;;  %v914_v35 = vmul.f32 -0.5, %v1631_v28  ;;  %v917_v39 = vand.u32 2147483647, %v1631_v28 }
 0x1eb   : > { %1632 = vpow2.f32 %v907_v29  ;;  %v894_v34 = vadd.f32 %v1628_v11, %v893_v30  ;;  %v1629_v11 = vld [vmem:[%s785_s22] ss:$0 sm:$0xff] }
 0x1ec   : > { %1634 = vlog2.f32 %v911_v31  ;;  %v915_v38 = vadd.f32 1.0, %v914_v35  ;;  %vm918_vm0 = vcmp.lt.f32.partialorder %v917_v39, 0.0004427343 }
 0x1ed   : > { %v901_v36 = vand.u32 2147483647, %v894_v34  ;;  %v898_v4 = vmax.f32 %v894_v34, 0.0 }
 0x1ee   : > { %v916_v45 = vmul.f32 %v1631_v28, %v915_v38  ;;  %v1052_v9 = vpop.f32.mrf.mxu2 }
 0x1ef   : > { %v904_v37 = vsub.f32 0.0, %v901_v36  ;;  %1056 = vst [vmem:[#allocation2 + $0x8] sm:$0xff] %v1052_v9 }
 0x1f1   : > { %v1633_v40 = vpop.eup %1632  ;;  %v909_v41 = vmul.f32 1.442695, %v904_v37 }
 0x1f2   : > { %v1635_v42 = vpop.eup %1634  ;;  %v920_v43 = vadd.f32 1.0, %v1633_v40  ;;  %v923_v46 = vmul.f32 -0.5, %v1633_v40  ;;  %v926_v52 = vand.u32 2147483647, %v1633_v40 }
 0x1f3   : > { %1636 = vpow2.f32 %v909_v41  ;;  %v913_v44 = vmul.f32 0.6931472, %v1635_v42 }
 0x1f4   : > { %1638 = vlog2.f32 %v920_v43  ;;  %v924_v50 = vadd.f32 1.0, %v923_v46  ;;  %vm927_vm1 = vcmp.lt.f32.partialorder %v926_v52, 0.0004427343 }
 0x1f5   : > { %v919_v48 = vsel %vm918_vm0, %v916_v45, %v913_v44 }
 0x1f6   : > { %v938_v49 = vadd.f32 %v919_v48, %v896_v47  ;;  %v925_v57 = vmul.f32 %v1633_v40, %v924_v50 }
 0x1f8   : > { %v1456_v51 = vadd.f32 -0.6931472, %v938_v49 }
 0x1f9   : > { %v1637_v53 = vpop.eup %1636 }
 0x1fa   : > { %v1639_v54 = vpop.eup %1638  ;;  %980 = vmatmul.f32.vlgmr.msra.gmra.mxu1 %v1456_v51  ;;  %v929_v55 = vadd.f32 1.0, %v1637_v53  ;;  %v932_v58 = vmul.f32 -0.5, %v1637_v53  ;;  %v935_v0 = vand.u32 2147483647, %v1637_v53 }
 0x1fb   : > { %v922_v56 = vmul.f32 0.6931472, %v1639_v54 }
 0x1fc   : > { %1640 = vlog2.f32 %v929_v55  ;;  %v933_v62 = vadd.f32 1.0, %v932_v58  ;;  %vm936_vm2 = vcmp.lt.f32.partialorder %v935_v0, 0.0004427343 }
 0x1fd   : > { %v928_v60 = vsel %vm927_vm1, %v925_v57, %v922_v56 }
 0x1fe   : > { %v939_v61 = vadd.f32 %v928_v60, %v897_v59  ;;  %v934_v3 = vmul.f32 %v1637_v53, %v933_v62 }
 0x200   : > { %v1457_v63 = vadd.f32 -0.6931472, %v939_v61 }
 0x202   : > { %v1641_v1 = vpop.eup %1640  ;;  %983 = vmatmul.f32.gmra.mxu1 %v1457_v63 }
 0x203   : > { %v931_v2 = vmul.f32 0.6931472, %v1641_v1 }
 0x205   : > { %v937_v5 = vsel %vm936_vm2, %v934_v3, %v931_v2 }
 0x206   : > { %v940_v6 = vadd.f32 %v937_v5, %v898_v4 }
 0x208   : > { %v1458_v7 = vadd.f32 -0.6931472, %v940_v6 }
 0x20a   : > { %986 = vmatmul.f32.gmra.mxu1 %v1458_v7 }
 0x277   : > { %v981_v13 = vpop.f32.mrf.mxu1 }
 0x278   : > { %v982_v14 = vadd.f32 %v1629_v11, %v981_v13 }
 0x27a   : > { %v1008_v15 = vmul.f32 %v996_v12, %v982_v14 }
 0x27c   : > { %1011 = vst [vmem:[#allocation3] sm:$0xff] %v1008_v15 }
 0x27f   : > { %v984_v16 = vpop.f32.mrf.mxu1 }
 0x280   : > { %v985_v19 = vadd.f32 %v1629_v11, %v984_v16 }
 0x282   : > { %v1009_v20 = vmul.f32 %v1001_v17, %v985_v19 }
 0x284   : > { %1012 = vst [vmem:[#allocation3 + $0x8] sm:$0xff] %v1009_v20 }
 0x287   : > { %v987_v21 = vpop.f32.mrf.mxu1 }
 0x288   : > { %v988_v23 = vadd.f32 %v1629_v11, %v987_v21 }
 0x28a   : > { %v1010_v24 = vmul.f32 %v1006_v22, %v988_v23 }
 0x28c   : > { %1013 = vst [vmem:[#allocation3 + $0x10] sm:$0xff] %v1010_v24 }
 0x28d LB: >> { %s1065_s22 = sld [smem:[#allocation6 + %s2034_s24]]  ;;  %s1069_s20 = scalar_lea.vmem [#allocation3], %s2034_s24  ;;  %s2034_s24 = sphi %s2032_s24, %s1064_s24  }
 0x28e   : >> { %s1066_s28 = sld [smem:[#allocation7 + %s2034_s24]]  ;;  %s1064_s24 = sadd.s32 1, %s2034_s24  }
 0x28f   : >> { %p1061_p5 = scmp.ge.s32.totalorder %s1064_s24, 24  }
 0x290   : > { %v1093_v31 = vld [vmem:[%s2408_s2 + $0x78] sm:$0xff] (%p1061_p5)  ;;  %v1092_v32 = vld [vmem:[%s2408_s2 + $0x70] sm:$0xff] (%p1061_p5)  ;;  %v1091_v33 = vld [vmem:[%s2408_s2 + $0x68] sm:$0xff] (%p1061_p5)  ;;  %s2046_s16 = smov (%p1061_p5), [#allocation21]   ;;  %s2621_s0 = sld [smem:[#allocation41_spill]] (%p1061_p5) }
 0x291   : > { %1098 = vmatpush.msra.mxu3 (%p1061_p5), %v1093_v31  ;;  %v1090_v34 = vld [vmem:[%s2408_s2 + $0x60] sm:$0xff] (%p1061_p5)  ;;  %v1089_v35 = vld [vmem:[%s2408_s2 + $0x58] sm:$0xff] (%p1061_p5)  ;;  %v1088_v36 = vld [vmem:[%s2408_s2 + $0x50] sm:$0xff] (%p1061_p5)  ;;  %s1205_s18 = sshll.u32 (%p1061_p5), %s2046_s16, 4  ;;  %p1570_p8 = scmp.eq.s32.totalorder (%p1061_p5), %s2164_s7, 2  ;;  %s1206_s18 = int_to_ptr.vmem [resolvable:$true] %s1205_s18 }
 0x292   : > { %v1087_v37 = vld [vmem:[%s2408_s2 + $0x48] sm:$0xff] (%p1061_p5)  ;;  %v1086_v38 = vld [vmem:[%s2408_s2 + $0x40] sm:$0xff] (%p1061_p5)  ;;  %v1085_v39 = vld [vmem:[%s2408_s2 + $0x38] sm:$0xff] (%p1061_p5)  ;;  %s2047_s29 = smov (%p1061_p5), 128  }
 0x293   : >> { %v1070_v25 = vld [vmem:[%s1069_s20] sm:$0x1]  ;;  %s1067_s27 = scalar_lea.vmem [#allocation2], %s1065_s22  ;;  %1099 = vmatpush.msra.mxu3 (%p1061_p5), %v1092_v32  ;;  %v1084_v40 = vld [vmem:[%s2408_s2 + $0x30] sm:$0xff] (%p1061_p5)  ;;  %v1083_v41 = vld [vmem:[%s2408_s2 + $0x28] sm:$0xff] (%p1061_p5) }
 0x294   : >> { %v1068_v27 = vld [vmem:[%s1067_s27] sm:$0x1]  ;;  %s1072_s25 = scalar_lea.vmem [#allocation4], %s1066_s28  ;;  %v1081_v43 = vld [vmem:[%s2408_s2 + $0x18] sm:$0xff] (%p1061_p5)  ;;  %v1080_v44 = vld [vmem:[%s2408_s2 + $0x10] sm:$0xff] (%p1061_p5) }
 0x295   : >> { %v1071_v28 = vmul.f32 %v1070_v25, %v1068_v27  ;;  %v1073_v29 = vld [vmem:[%s1072_s25] sm:$0x1]  ;;  %1063 = sbr.rel (!%p1061_p5) target bundleno = 653 (0x28d), region = 202  ;;  %1100 = vmatpush.msra.mxu3 (%p1061_p5), %v1091_v33  ;;  %v1079_v45 = vld [vmem:[%s2408_s2 + $0x8] sm:$0xff] (%p1061_p5)  ;;  %v1168_v49 = vld [vmem:[%s2410_s21 + $0x78] sm:$0xff] (%p1061_p5) }
 0x296   : > { %v1082_v42 = vld [vmem:[%s2408_s2 + $0x20] sm:$0xff] (%p1061_p5)  ;;  %1173 = vmatpush.msrb.mxu0 (%p1061_p5), %v1168_v49  ;;  %1486 = vmatpush.msrb.mxu2 (%p1061_p5), %v1168_v49  ;;  %v1167_v50 = vld [vmem:[%s2410_s21 + $0x70] sm:$0xff] (%p1061_p5)  ;;  %v1166_v51 = vld [vmem:[%s2410_s21 + $0x68] sm:$0xff] (%p1061_p5)  ;;  %s1207_s1 = sshll.u32 (%p1061_p5), %s2621_s0, 4  ;;  %s1208_s1 = int_to_ptr.hbm [resolvable:$true] %s1207_s1 }
 0x297   : >> { %v1074_v30 = vadd.f32 %v1073_v29, %v1071_v28  ;;  %1101 = vmatpush.msra.mxu3 (%p1061_p5), %v1090_v34  ;;  %v1078_v46 = vld [vmem:[%s2408_s2] sm:$0xff] (%p1061_p5)  ;;  %v1164_v53 = vld [vmem:[%s2410_s21 + $0x58] sm:$0xff] (%p1061_p5)  ;;  %v1163_v54 = vld [vmem:[%s2410_s21 + $0x50] sm:$0xff] (%p1061_p5) }
 0x298   : > { %1174 = vmatpush.msrb.mxu0 (%p1061_p5), %v1167_v50  ;;  %1487 = vmatpush.msrb.mxu2 (%p1061_p5), %v1167_v50  ;;  %v1165_v52 = vld [vmem:[%s2410_s21 + $0x60] sm:$0xff] (%p1061_p5)  ;;  %v1162_v55 = vld [vmem:[%s2410_s21 + $0x48] sm:$0xff] (%p1061_p5)  ;;  %v1160_v57 = vld [vmem:[%s2410_s21 + $0x38] sm:$0xff] (%p1061_p5) }
 0x299   : >> { %1075 = vst [vmem:[%s1072_s25] sm:$0x1] %v1074_v30  ;;  %1102 = vmatpush.msra.mxu3 (%p1061_p5), %v1089_v35  ;;  %v1161_v56 = vld [vmem:[%s2410_s21 + $0x40] sm:$0xff] (%p1061_p5)  ;;  %v1159_v58 = vld [vmem:[%s2410_s21 + $0x30] sm:$0xff] (%p1061_p5)  ;;  %v1158_v59 = vld [vmem:[%s2410_s21 + $0x28] sm:$0xff] (%p1061_p5) }
 0x29a   : > { %1175 = vmatpush.msrb.mxu0 %v1166_v51  ;;  %1488 = vmatpush.msrb.mxu2 %v1166_v51  ;;  %v1157_v60 = vld [vmem:[%s2410_s21 + $0x20] sm:$0xff]  ;;  %v1156_v61 = vld [vmem:[%s2410_s21 + $0x18] sm:$0xff]  ;;  %v1155_v62 = vld [vmem:[%s2410_s21 + $0x10] sm:$0xff] }
 0x29b   : > { %1103 = vmatpush.msra.mxu3 %v1088_v36  ;;  %v1154_v63 = vld [vmem:[%s2410_s21 + $0x8] sm:$0xff]  ;;  %v1153_v0 = vld [vmem:[%s2410_s21] sm:$0xff] }
 0x29c   : > { %1176 = vmatpush.msrb.mxu0 %v1165_v52  ;;  %1489 = vmatpush.msrb.mxu2 %v1165_v52  ;;  %v1642_v1 = vld [vmem:[%s788_s11] ss:$0 sm:$0xff] }
 0x29d   : > { %1104 = vmatpush.msra.mxu3 %v1087_v37 }
 0x29e   : > { %1177 = vmatpush.msrb.mxu0 %v1164_v53  ;;  %1490 = vmatpush.msrb.mxu2 %v1164_v53 }
 0x29f   : > { %1105 = vmatpush.msra.mxu3 %v1086_v38  ;;  %v1643_v38 = vld [vmem:[%s791_s30] ss:$0 sm:$0xff]  ;;  %s2048_s30 = smov 8  }
 0x2a0   : > { %v1076_v47 = vld [vmem:[#allocation4] sm:$0xff]  ;;  %v1077_v48 = vld [vmem:[#allocation4 + $0x8] sm:$0xff]  ;;  %1178 = vmatpush.msrb.mxu0 %v1163_v54  ;;  %1491 = vmatpush.msrb.mxu2 %v1163_v54 }
 0x2a1   : > { %1106 = vmatpush.msra.mxu3 %v1085_v39 }
 0x2a2   : > { %1179 = vmatpush.msrb.mxu0 %v1162_v55  ;;  %1492 = vmatpush.msrb.mxu2 %v1162_v55 }
 0x2a3   : > { %1107 = vmatpush.msra.mxu3 %v1084_v40 }
 0x2a4   : > { %1180 = vmatpush.msrb.mxu0 %v1161_v56  ;;  %1493 = vmatpush.msrb.mxu2 %v1161_v56 }
 0x2a5   : > { %1108 = vmatpush.msra.mxu3 %v1083_v41 }
 0x2a6   : > { %1181 = vmatpush.msrb.mxu0 %v1160_v57  ;;  %1494 = vmatpush.msrb.mxu2 %v1160_v57 }
 0x2a7   : > { %1109 = vmatpush.msra.mxu3 %v1082_v42 }
 0x2a8   : > { %1182 = vmatpush.msrb.mxu0 %v1159_v58  ;;  %1495 = vmatpush.msrb.mxu2 %v1159_v58 }
 0x2a9   : > { %1110 = vmatpush.msra.mxu3 %v1081_v43 }
 0x2aa   : > { %1183 = vmatpush.msrb.mxu0 %v1158_v59  ;;  %1496 = vmatpush.msrb.mxu2 %v1158_v59 }
 0x2ab   : > { %1111 = vmatpush.msra.mxu3 %v1080_v44 }
 0x2ac   : > { %1184 = vmatpush.msrb.mxu0 %v1157_v60  ;;  %1497 = vmatpush.msrb.mxu2 %v1157_v60 }
 0x2ad   : > { %1112 = vmatpush.msra.mxu3 %v1079_v45 }
 0x2ae   : > { %1185 = vmatpush.msrb.mxu0 %v1156_v61  ;;  %1498 = vmatpush.msrb.mxu2 %v1156_v61 }
 0x2af   : > { %1113 = vmatpush.msra.mxu3 %v1078_v46 }
 0x2b0   : > { %1114 = vmatmul.f32.vlgmr.msra.gmra.mxu3 %v1076_v47  ;;  %1186 = vmatpush.msrb.mxu0 %v1155_v62 }
 0x2b1   : > { %1499 = vmatpush.msrb.mxu2 %v1155_v62 }
 0x2b2   : > { %1187 = vmatpush.msrb.mxu0 %v1154_v63 }
 0x2b3   : > { %1500 = vmatpush.msrb.mxu2 %v1154_v63 }
 0x2b4   : > { %1188 = vmatpush.msrb.mxu0 %v1153_v0 }
 0x2b5   : > { %1501 = vmatpush.msrb.mxu2 %v1153_v0 }
 0x2b8   : > { %1117 = vmatmul.f32.gmra.mxu3 %v1077_v48 }
 0x333   : > { %v1115_v2 = vpop.f32.mrf.mxu3 }
 0x334   : > { %v1116_v3 = vadd.f32 %v1642_v1, %v1115_v2 }
 0x336   : > { %v1123_v4 = vand.u32 2147483647, %v1116_v3  ;;  %v1121_v24 = vmax.f32 %v1116_v3, 0.0 }
 0x338   : > { %v1125_v5 = vsub.f32 0.0, %v1123_v4 }
 0x33a   : > { %v1127_v6 = vmul.f32 1.442695, %v1125_v5 }
 0x33b   : > { %v1118_v7 = vpop.f32.mrf.mxu3 }
 0x33c   : > { %1644 = vpow2.f32 %v1127_v6  ;;  %v1119_v8 = vadd.f32 %v1642_v1, %v1118_v7 }
 0x33e   : > { %v1124_v9 = vand.u32 2147483647, %v1119_v8  ;;  %v1122_v34 = vmax.f32 %v1119_v8, 0.0 }
 0x340   : > { %v1126_v10 = vsub.f32 0.0, %v1124_v9 }
 0x342   : > { %v1645_v11 = vpop.eup %1644  ;;  %v1129_v12 = vmul.f32 1.442695, %v1126_v10 }
 0x343   : > { %v1131_v13 = vadd.f32 1.0, %v1645_v11  ;;  %v1134_v14 = vmul.f32 -0.5, %v1645_v11  ;;  %v1137_v16 = vand.u32 2147483647, %v1645_v11 }
 0x344   : > { %1646 = vpow2.f32 %v1129_v12 }
 0x345   : > { %1648 = vlog2.f32 %v1131_v13  ;;  %v1135_v15 = vadd.f32 1.0, %v1134_v14  ;;  %vm1138_vm3 = vcmp.lt.f32.partialorder %v1137_v16, 0.0004427343 }
 0x347   : > { %v1136_v22 = vmul.f32 %v1645_v11, %v1135_v15 }
 0x34a   : > { %v1647_v17 = vpop.eup %1646 }
 0x34b   : > { %v1649_v19 = vpop.eup %1648  ;;  %v1140_v20 = vadd.f32 1.0, %v1647_v17  ;;  %v1143_v23 = vmul.f32 -0.5, %v1647_v17  ;;  %v1146_v30 = vand.u32 2147483647, %v1647_v17 }
 0x34c   : > { %v1133_v21 = vmul.f32 0.6931472, %v1649_v19 }
 0x34d   : > { %1650 = vlog2.f32 %v1140_v20  ;;  %v1144_v28 = vadd.f32 1.0, %v1143_v23  ;;  %vm1147_vm4 = vcmp.lt.f32.partialorder %v1146_v30, 0.0004427343 }
 0x34e   : > { %v1139_v25 = vsel %vm1138_vm3, %v1136_v22, %v1133_v21 }
 0x34f   : > { %v1149_v27 = vadd.f32 %v1139_v25, %v1121_v24  ;;  %v1145_v33 = vmul.f32 %v1647_v17, %v1144_v28 }
 0x351   : > { %v1459_v29 = vadd.f32 -0.6931472, %v1149_v27 }
 0x353   : > { %v1651_v31 = vpop.eup %1650  ;;  %1189 = vmatmul.f32.vlgmr.msrb.gmra.mxu0 %v1459_v29 }
 0x354   : > { %v1142_v32 = vmul.f32 0.6931472, %v1651_v31 }
 0x356   : > { %v1148_v35 = vsel %vm1147_vm4, %v1145_v33, %v1142_v32 }
 0x357   : > { %v1150_v36 = vadd.f32 %v1148_v35, %v1122_v34 }
 0x359   : > { %v1460_v37 = vadd.f32 -0.6931472, %v1150_v36 }
 0x35b   : > { %1192 = vmatmul.f32.vlgmr.msrb.gmra.mxu2 %v1460_v37 }
 0x3d0   : > { %v1190_v39 = vpop.f32.mrf.mxu0 }
 0x3d1   : > { %v1191_v40 = vadd.f32 %v1643_v38, %v1190_v39 }
 0x3d3   : > { %v1196_v41 = vadd.f32 %v1191_v40, %v2476_v18 }
 0x3d5   : > { %1198 = vst [vmem:[#allocation21] sm:$0xff] %v1196_v41 }
 0x3de   : > { %v1193_v42 = vpop.f32.mrf.mxu2 }
 0x3df   : > { %v1194_v43 = vadd.f32 %v1643_v38, %v1193_v42 }
 0x3e1   : > { %v1197_v44 = vadd.f32 %v1194_v43, %v2482_v26 }
 0x3e3   : > { %1199 = vst [vmem:[#allocation21 + $0x8] sm:$0xff] %v1197_v44 }
 0x3e4   : > { %1529 = dma.vmem_to_hbm [thread:$0]  (%p1570_p8), %s1206_s18, 256, %s1208_s1, [#allocation10], %s2047_s29, %s2047_s29, %s2048_s30  }
 0x3e5   : > { %2013 = dma.done.wait (%p1570_p8), [#allocation10], 256  }
 0x3e6   : > { %2015 = vsyncadd (%p1570_p8), [#allocation10], 4294967040 }
 0x3e7 PF: > { %s2622_s1 = sld [smem:[#allocation29_spill]]  ;;  %s2625_s18 = smov %s2022_s19 }
 0x3e8   : > { %s2623_s17 = sld [smem:[#allocation28_spill]] }
 0x3e9   : > { %s2624_s2 = sld [smem:[#allocation30_spill]] }
 0x3ed   : > { %p41_p9 = scmp.ge.s32.totalorder %s2622_s1, 5  }
 0x3ee   : > { %s2626_s19 = smov %s2623_s17 }
 0x3ef   :  { %43 = sbr.rel (!%p41_p9) target bundleno = 29 (0x1d), region = 213 }
 0x3f4   :  { %1224 = vsyncpa [#allocation9], 1 }
 0x3f5   :  { %1226 = vsyncpa [#allocation9 + $0x1], 1 }
 0x3f6   :  { %1227 = vsyncpa [#allocation12], 1 }
 0x3f7   :  { %1228 = vsyncpa [#allocation15], 1 }
 0x3f8   :  { %1229 = vsyncpa [#allocation10], 1 }
 0x3f9   :  { %1231 = vsyncpa [#allocation10 + $0x1], 1 }

</bundles_post_ra>
